<compile_context>
chip_gen: v7x
topology: tpu7x:2x2x1
jax: 0.10.0
libtpu: 0.0.40
codegen_flags: <defaults>
</compile_context>

<pallas_src>
import functools
import math

import jax
import jax.numpy as jnp
from jax import lax
from jax.experimental import pallas as pl
from jax.experimental.pallas import tpu as pltpu

_MIB = 1024 * 1024
_VMEM_BUDGET = 40 * _MIB      # conservative working-set budget (fits v5e/v6e/v7x)
_VMEM_LIMIT_CAP = 64 * _MIB   # never ask for more scoped VMEM than v7x physically has


def _round_up(x, m):
    return ((x + m - 1) // m) * m


# ---------------------------------------------------------------------------
# VMEM sizing helpers (trace-time Python; conservative: counts double-buffering
# of every operand plus the large matmul/reshape temporaries).
# ---------------------------------------------------------------------------
def _gru_vmem_bytes(tt, b, d, h, csz):
    return (2 * tt * b * d * csz          # x block (double-buffered)
            + tt * b * d * csz            # possible reshape copy of x
            + 2 * tt * b * h * csz        # out block (double-buffered)
            + 2 * b * h * 4               # hT output block
            + 2 * b * h * 4               # h0
            + 2 * d * 3 * h * csz         # W_ih
            + 2 * h * 3 * h * csz         # W_hh
            + 4 * 2 * 3 * h * 4           # biases
            + 2 * tt * b * 3 * h * 4      # gx_scratch + matmul result temp
            + b * h * 4)                  # h_scratch


def _cls_vmem_bytes(tt, vt, b, h, csz):
    return (2 * tt * b * h * csz          # hidden block
            + tt * b * h * csz            # possible reshape copy
            + 2 * h * vt * csz            # W_c tile
            + 2 * vt * 4                  # bias tile
            + 2 * tt * b * vt * csz       # logits block
            + tt * b * vt * 4)            # f32 matmul result before cast


def _choose_time_chunk(T, b_pad, d_pad, h_pad, csz):
    cands = []
    if T <= 128:
        cands.append(T)
    cands += [c for c in (128, 96, 64, 48, 32, 24, 16, 8) if c < T]
    for c in cands:
        if _gru_vmem_bytes(c, b_pad, d_pad, h_pad, csz) <= _VMEM_BUDGET:
            return c
    return cands[-1] if cands else max(T, 1)


def _choose_cls_tiles(t_pad, v_pad, b_pad, h_pad, csz):
    # Prefer the largest time block (fewer re-streams of W_c from HBM), then the
    # largest lane-dense vocab tile that still fits.  Both must divide the padded dims.
    vt_cands = [v for v in range(min(v_pad, 2048), 0, -128) if v_pad % v == 0]
    tt_cands = [d for d in range(min(t_pad, 512), 0, -1) if t_pad % d == 0]
    for tt in tt_cands:
        for vt in vt_cands:
            if _cls_vmem_bytes(tt, vt, b_pad, h_pad, csz) <= _VMEM_BUDGET:
                return tt, vt
    return 1, 128


# ---------------------------------------------------------------------------
# Kernel 1: GRU recurrence over one chunk of timesteps (grid axis 0 = time chunks)
# ---------------------------------------------------------------------------
def gru_chunk_kernel(x_ref, h0_ref, wih_ref, bih_ref, whh_ref, bhh_ref,
                     out_ref, hT_ref, h_scratch, gx_scratch,
                     *, hidden_pad, t_block, valid_t, compute_dtype):
    """
    x_ref:      (Tt, B, D)   compute_dtype   fused [embed | enc_mem] (zero padded)
    h0_ref:     (B, H)       f32
    wih_ref:    (D, 3H)      compute_dtype
    bih_ref:    (1, 3H)      f32
    whh_ref:    (H, 3H)      compute_dtype
    bhh_ref:    (1, 3H)      f32
    out_ref:    (Tt, B, H)   compute_dtype   per-timestep hidden states
    hT_ref:     (B, H)       f32             exact final hidden state (last chunk only)
    h_scratch:  (B, H)       f32             carry across grid steps
    gx_scratch: (Tt, B, 3H)  f32
    H is the lane-padded hidden size; gates are [r | z | n] (torch.nn.GRU order).
    """
    H = hidden_pad
    Tt, B, D = x_ref.shape

    @pl.when(pl.program_id(0) == 0)
    def _():
        h_scratch[...] = h0_ref[...]

    # Hoisted input projection: one fused 2-D MXU matmul for the whole chunk.
    x2 = x_ref[...].reshape(Tt * B, D)
    gx = jnp.dot(x2, wih_ref[...], preferred_element_type=jnp.float32)
    gx_scratch[...] = (gx + bih_ref[...]).reshape(Tt, B, 3 * H)

    # Loop-invariant values hoisted out of the serial time loop.
    whh = whh_ref[...]                                        # (H, 3H) compute_dtype
    bhh_b = jnp.broadcast_to(bhh_ref[...], (B, 3 * H))        # f32, broadcast once
    base_t = pl.program_id(0) * t_block
    needs_guard = (valid_t % t_block) != 0                    # static Python bool

    def step(t):
        def body():
            h = h_scratch[...]                                # (B, H) f32 carry
            gh = jnp.dot(h.astype(compute_dtype), whh,
                         preferred_element_type=jnp.float32) + bhh_b
            gxt = gx_scratch[t]                               # (B, 3H) f32
            # Fused sigmoid over [r|z]; slices are lane-aligned (H multiple of 128).
            rz = jax.nn.sigmoid(gxt[:, :2 * H] + gh[:, :2 * H])
            r = rz[:, :H]
            z = rz[:, H:]
            n = jnp.tanh(gxt[:, 2 * H:] + r * gh[:, 2 * H:])
            h_new = n + z * (h - n)                           # == (1-z)*n + z*h
            h_scratch[...] = h_new
            out_ref[t] = h_new.astype(out_ref.dtype)

        if needs_guard:
            pl.when(base_t + t < valid_t)(body)               # skip zero-padded steps
        else:
            body()

    if t_block <= 32:
        # Full static unroll: lets the scheduler overlap step t+1's W_hh pushes (vex slot)
        # with step t's sigmoid/tanh (EUP) and VPU gate math.
        for t in range(t_block):
            step(t)
    else:
        def loop_body(t, carry):
            step(t)
            return carry
        lax.fori_loop(0, t_block, loop_body, 0, unroll=8)     # partial unroll

    # Export exact final hidden state from the chunk containing timestep T-1
    # (always the last grid chunk because T_pad = round_up(T, Tt)).
    @pl.when(pl.program_id(0) == pl.num_programs(0) - 1)
    def _():
        hT_ref[...] = h_scratch[...]


# ---------------------------------------------------------------------------
# Kernel 2: vocab classifier, tiled over (time chunks, vocab tiles)
# ---------------------------------------------------------------------------
def classifier_kernel(h_ref, wc_ref, bc_ref, logits_ref):
    """
    h_ref:      (Tt2, B, H)   compute_dtype
    wc_ref:     (H, Vt)       compute_dtype
    bc_ref:     (1, Vt)       f32
    logits_ref: (Tt2, B, Vt)  compute_dtype   (lane-dense tile, Vt multiple of 128)
    """
    Tt, B, H = h_ref.shape
    Vt = wc_ref.shape[1]
    h2 = h_ref[...].reshape(Tt * B, H)                        # one 2-D MXU matmul
    logits = jnp.dot(h2, wc_ref[...], preferred_element_type=jnp.float32)
    logits = logits + bc_ref[...]                             # bias add in f32
    logits_ref[...] = logits.astype(logits_ref.dtype).reshape(Tt, B, Vt)


# ---------------------------------------------------------------------------
# Wrapper: padding / layout glue + the two pallas_calls
# ---------------------------------------------------------------------------
def rnn_decoder_forward(word, state, enc_mem, params, *, compute_dtype=jnp.bfloat16):
    """Pallas-backed equivalent of RNNDecoder.forward(word=..., state=..., enc_mem=...).

    word:    (B, T) int32
    state:   (1, B, H) f32
    enc_mem: (B, T, enc_mem_size) f32
    Returns dict with 'states' (1,B,H) f32, 'output' (B,T,H) and 'logits' (B,T,V)
    in compute_dtype (bf16 on the performance path, f32 on the exact path).
    """
    emb_table = params['emb']
    B, T = word.shape
    E = emb_table.shape[1]
    M = enc_mem.shape[-1]
    H = params['whh'].shape[0]
    V = params['wc'].shape[1]
    csz = jnp.dtype(compute_dtype).itemsize

    # Padded sizes: batch -> sublane multiple, features / hidden / vocab -> lane multiples.
    B_pad = _round_up(max(B, 8), 8)
    H_pad = _round_up(H, 128)
    V_pad = _round_up(V, 128)
    D = E + M
    D_pad = _round_up(D, 128)

    Tt = _choose_time_chunk(T, B_pad, D_pad, H_pad, csz)       # recurrence time chunk
    T_pad = _round_up(T, Tt)
    Tt2, Vt = _choose_cls_tiles(T_pad, V_pad, B_pad, H_pad, csz)  # classifier tiles

    # ---- glue: embedding gather, dropout(p=0)=identity, concat, pad, cast ----
    embed = jnp.take(emb_table, word, axis=0)                  # (B, T, E)
    x = jnp.concatenate([embed, enc_mem.astype(embed.dtype)], axis=-1)   # (B, T, D)
    x_tm = jnp.swapaxes(x, 0, 1)                               # (T, B, D)
    x_tm = jnp.pad(x_tm, ((0, T_pad - T), (0, B_pad - B), (0, D_pad - D)))
    x_tm = x_tm.astype(compute_dtype)

    h0 = jnp.pad(state[0].astype(jnp.float32), ((0, B_pad - B), (0, H_pad - H)))

    def pad_gate_cols(w):
        # (R, 3H) -> (R, 3*H_pad): zero-pad each [r|z|n] gate block to lane-aligned width.
        R = w.shape[0]
        w3 = w.reshape(R, 3, H)
        return jnp.pad(w3, ((0, 0), (0, 0), (0, H_pad - H))).reshape(R, 3 * H_pad)

    wih = jnp.pad(pad_gate_cols(params['wih']),
                  ((0, D_pad - D), (0, 0))).astype(compute_dtype)      # (D_pad, 3H_pad)
    whh = jnp.pad(pad_gate_cols(params['whh']),
                  ((0, H_pad - H), (0, 0))).astype(compute_dtype)      # (H_pad, 3H_pad)
    bih = pad_gate_cols(params['bih']).astype(jnp.float32)             # (1, 3H_pad)
    bhh = pad_gate_cols(params['bhh']).astype(jnp.float32)             # (1, 3H_pad)
    wc = jnp.pad(params['wc'], ((0, H_pad - H), (0, V_pad - V))).astype(compute_dtype)
    bc = jnp.pad(params['bc'], ((0, 0), (0, V_pad - V))).astype(jnp.float32)

    # ---- kernel 1: GRU recurrence, grid over time chunks (sequential carry) ----
    gru_bytes = _gru_vmem_bytes(Tt, B_pad, D_pad, H_pad, csz)
    gru_kernel = functools.partial(gru_chunk_kernel, hidden_pad=H_pad, t_block=Tt,
                                   valid_t=T, compute_dtype=compute_dtype)
    out_full, hT = pl.pallas_call(
        gru_kernel,
        out_shape=(jax.ShapeDtypeStruct((T_pad, B_pad, H_pad), compute_dtype),
                   jax.ShapeDtypeStruct((B_pad, H_pad), jnp.float32)),
        grid=(T_pad // Tt,),
        in_specs=[
            pl.BlockSpec((Tt, B_pad, D_pad), lambda i: (i, 0, 0)),
            pl.BlockSpec((B_pad, H_pad), lambda i: (0, 0)),
            pl.BlockSpec((D_pad, 3 * H_pad), lambda i: (0, 0)),
            pl.BlockSpec((1, 3 * H_pad), lambda i: (0, 0)),
            pl.BlockSpec((H_pad, 3 * H_pad), lambda i: (0, 0)),
            pl.BlockSpec((1, 3 * H_pad), lambda i: (0, 0)),
        ],
        out_specs=(pl.BlockSpec((Tt, B_pad, H_pad), lambda i: (i, 0, 0)),
                   pl.BlockSpec((B_pad, H_pad), lambda i: (0, 0))),
        scratch_shapes=[pltpu.VMEM((B_pad, H_pad), jnp.float32),
                        pltpu.VMEM((Tt, B_pad, 3 * H_pad), jnp.float32)],
        compiler_params=pltpu.CompilerParams(
            dimension_semantics=("arbitrary",),
            vmem_limit_bytes=int(min(_VMEM_LIMIT_CAP,
                                     max(32 * _MIB, gru_bytes + 8 * _MIB)))),
    )(x_tm, h0, wih, bih, whh, bhh)

    # ---- kernel 2: classifier, fully parallel grid over (time chunks, vocab tiles) ----
    cls_bytes = _cls_vmem_bytes(Tt2, Vt, B_pad, H_pad, csz)
    logits_full = pl.pallas_call(
        classifier_kernel,
        out_shape=jax.ShapeDtypeStruct((T_pad, B_pad, V_pad), compute_dtype),
        grid=(T_pad // Tt2, V_pad // Vt),
        in_specs=[
            pl.BlockSpec((Tt2, B_pad, H_pad), lambda i, j: (i, 0, 0)),
            pl.BlockSpec((H_pad, Vt), lambda i, j: (0, j)),
            pl.BlockSpec((1, Vt), lambda i, j: (0, j)),
        ],
        out_specs=pl.BlockSpec((Tt2, B_pad, Vt), lambda i, j: (i, 0, j)),
        compiler_params=pltpu.CompilerParams(
            dimension_semantics=("parallel", "parallel"),
            vmem_limit_bytes=int(min(_VMEM_LIMIT_CAP,
                                     max(32 * _MIB, cls_bytes + 8 * _MIB)))),
    )(out_full, wc, bc)

    # ---- crop padding, restore PyTorch batch-first layout ----
    out = jnp.swapaxes(out_full[:T, :B, :H], 0, 1)             # (B, T, H) compute_dtype
    logits = jnp.swapaxes(logits_full[:T, :B, :V], 0, 1)       # (B, T, V) compute_dtype
    states = hT[:B, :H][None]                                  # (1, B, H) f32 (exact)
    return {'states': states, 'output': out, 'logits': logits}


# ---------------------------------------------------------------------------
# Pure-JAX reference (PyTorch GRU semantics) and synthetic parameters
# ---------------------------------------------------------------------------
def ref_forward(word, state, enc_mem, p):
    embed = jnp.take(p['emb'], word, axis=0)
    x = jnp.concatenate([embed, enc_mem], axis=-1).astype(jnp.float32)
    H = p['whh'].shape[0]

    def step(h, x_t):
        gx = x_t @ p['wih'] + p['bih'][0]
        gh = h @ p['whh'] + p['bhh'][0]
        r = jax.nn.sigmoid(gx[:, :H] + gh[:, :H])
        z = jax.nn.sigmoid(gx[:, H:2 * H] + gh[:, H:2 * H])
        n = jnp.tanh(gx[:, 2 * H:] + r * gh[:, 2 * H:])
        h_new = (1.0 - z) * n + z * h
        return h_new, h_new

    hT, outs = lax.scan(step, state[0], jnp.swapaxes(x, 0, 1))
    out = jnp.swapaxes(outs, 0, 1)
    logits = out @ p['wc'] + p['bc'][0]
    return out, logits, hT


def make_params(key, vocab_size, embed_size, enc_mem_size, hidden_size):
    """Deterministic synthetic parameters matching RNNDecoder's __init__ shapes."""
    D = embed_size + enc_mem_size
    H = hidden_size
    k = jax.random.split(key, 8)

    def unif(kk, shape, bound):
        return jax.random.uniform(kk, shape, jnp.float32, -bound, bound)

    # nn.init.kaiming_uniform_ : bound = sqrt(6 / fan_in)
    emb = unif(k[0], (vocab_size, embed_size), math.sqrt(6.0 / embed_size))
    # GRU params: torch default uniform(-1/sqrt(H), 1/sqrt(H)); stored transposed.
    gru_b = 1.0 / math.sqrt(H)
    wih = unif(k[1], (D, 3 * H), gru_b)
    whh = unif(k[2], (H, 3 * H), gru_b)
    bih = unif(k[3], (1, 3 * H), gru_b)
    bhh = unif(k[4], (1, 3 * H), gru_b)
    # classifier: kaiming-uniform weight (V, H) stored transposed (H, V); torch-default bias.
    wc = unif(k[5], (H, vocab_size), math.sqrt(6.0 / H))
    bc = unif(k[6], (1, vocab_size), 1.0 / math.sqrt(H))
    return {'emb': emb, 'wih': wih, 'bih': bih, 'whh': whh, 'bhh': bhh,
            'wc': wc, 'bc': bc}


if __name__ == "__main__":
    B, T = 2, 8
    vocab_size = 64
    embed_size = 32
    enc_mem_size = 32
    hidden_size = 32

    key = jax.random.PRNGKey(0)
    kp, kw, ke = jax.random.split(key, 3)

    params = make_params(kp, vocab_size, embed_size, enc_mem_size, hidden_size)
    word = jax.random.randint(kw, (B, T), 0, vocab_size, dtype=jnp.int32)
    enc_mem = jax.random.normal(ke, (B, T, enc_mem_size), dtype=jnp.float32)
    state = jnp.zeros((1, B, hidden_size), jnp.float32)   # init_hidden(bs)

    ref_out, ref_logits, ref_hT = ref_forward(word, state, enc_mem, params)

    # Exact-semantics check: f32 compute path.
    out_f32 = rnn_decoder_forward(word, state, enc_mem, params,
                                  compute_dtype=jnp.float32)
    jax.block_until_ready(out_f32)
    assert jnp.allclose(out_f32['output'], ref_out, atol=1e-4, rtol=1e-4)
    assert jnp.allclose(out_f32['logits'], ref_logits, atol=1e-4, rtol=1e-4)
    assert jnp.allclose(out_f32['states'][0], ref_hT, atol=1e-4, rtol=1e-4)

    # Performance path: bf16 MXU inputs / bf16 activations, f32 carry & gates.
    out_bf16 = rnn_decoder_forward(word, state, enc_mem, params,
                                   compute_dtype=jnp.bfloat16)
    jax.block_until_ready(out_bf16)
    assert jnp.allclose(out_bf16['output'], ref_out, atol=1.5e-1, rtol=5e-2)
    assert jnp.allclose(out_bf16['logits'], ref_logits, atol=1.5e-1, rtol=5e-2)
    assert jnp.allclose(out_bf16['states'][0], ref_hT, atol=1.5e-1, rtol=5e-2)

    print("KERNEL_OK")
</pallas_src>

<mosaic_0001>
module attributes {stable_mosaic.version = 11 : i64} {
  func.func @gru_chunk_kernel(%arg0: i32, %arg1: memref<8x8x128xf32, #tpu.memory_space<vmem>>, %arg2: memref<8x128xf32, #tpu.memory_space<vmem>>, %arg3: memref<128x384xf32, #tpu.memory_space<vmem>>, %arg4: memref<1x384xf32, #tpu.memory_space<vmem>>, %arg5: memref<128x384xf32, #tpu.memory_space<vmem>>, %arg6: memref<1x384xf32, #tpu.memory_space<vmem>>, %arg7: memref<8x8x128xf32, #tpu.memory_space<vmem>>, %arg8: memref<8x128xf32, #tpu.memory_space<vmem>>, %arg9: memref<8x128xf32, #tpu.memory_space<vmem>>, %arg10: memref<8x8x384xf32, #tpu.memory_space<vmem>>) attributes {dimension_semantics = [#tpu.dimension_semantics<arbitrary>], iteration_bounds = array<i64: 1>, scalar_prefetch = 0 : i64, scratch_operands = 2 : i64, tpu.core_type = #tpu.core_type<tc>, window_params = [{transform_indices = @transform_0, window_bounds = array<i64: 8, 8, 128>}, {pipeline_mode = #tpu.pipeline_mode<synchronous>, transform_indices = @transform_1, window_bounds = array<i64: 8, 128>}, {pipeline_mode = #tpu.pipeline_mode<synchronous>, transform_indices = @transform_2, window_bounds = array<i64: 128, 384>}, {pipeline_mode = #tpu.pipeline_mode<synchronous>, transform_indices = @transform_3, window_bounds = array<i64: 1, 384>}, {pipeline_mode = #tpu.pipeline_mode<synchronous>, transform_indices = @transform_4, window_bounds = array<i64: 128, 384>}, {pipeline_mode = #tpu.pipeline_mode<synchronous>, transform_indices = @transform_5, window_bounds = array<i64: 1, 384>}, {transform_indices = @transform_6, window_bounds = array<i64: 8, 8, 128>}, {pipeline_mode = #tpu.pipeline_mode<synchronous>, transform_indices = @transform_7, window_bounds = array<i64: 8, 128>}]} {
    %c0_i32 = arith.constant 0 : i32
    %0 = arith.cmpi eq, %arg0, %c0_i32 : i32
    %1 = arith.extui %0 : i1 to i32
    %c0_i32_0 = arith.constant 0 : i32
    %2 = arith.cmpi ne, %1, %c0_i32_0 : i32
    scf.if %2 {
      %c0_105 = arith.constant 0 : index
      %c0_106 = arith.constant 0 : index
      %235 = vector.load %arg2[%c0_105, %c0_106] : memref<8x128xf32, #tpu.memory_space<vmem>>, vector<8x128xf32>
      %c0_107 = arith.constant 0 : index
      %c0_108 = arith.constant 0 : index
      %236 = vector.load %arg9[%c0_107, %c0_108] : memref<8x128xf32, #tpu.memory_space<vmem>>, vector<8x128xf32>
      tpu.vector_store %arg9[%c0_107, %c0_108], %235 {strides = array<i32>} : memref<8x128xf32, #tpu.memory_space<vmem>>, vector<8x128xf32>,
    } else {
    }
    %c0 = arith.constant 0 : index
    %c0_1 = arith.constant 0 : index
    %c0_2 = arith.constant 0 : index
    %3 = vector.load %arg1[%c0, %c0_1, %c0_2] : memref<8x8x128xf32, #tpu.memory_space<vmem>>, vector<8x8x128xf32>
    %4 = vector.shape_cast %3 : vector<8x8x128xf32> to vector<64x128xf32>
    %c0_3 = arith.constant 0 : index
    %c0_4 = arith.constant 0 : index
    %5 = vector.load %arg3[%c0_3, %c0_4] : memref<128x384xf32, #tpu.memory_space<vmem>>, vector<128x384xf32>
    %cst = arith.constant dense<0.000000e+00> : vector<64x384xf32>
    %6 = tpu.matmul %4, %5, %cst {dimension_numbers = #tpu.dot_dimension_numbers<[1], [0], [0], [1], [0, 0, 1, 1], [], []>} : vector<64x128xf32>, vector<128x384xf32>, vector<64x384xf32> -> vector<64x384xf32>
    %c0_5 = arith.constant 0 : index
    %c0_6 = arith.constant 0 : index
    %7 = vector.load %arg4[%c0_5, %c0_6] : memref<1x384xf32, #tpu.memory_space<vmem>>, vector<1x384xf32>
    %8 = vector.broadcast %7 : vector<1x384xf32> to vector<64x384xf32>
    %9 = arith.addf %6, %8 : vector<64x384xf32>
    %10 = vector.shape_cast %9 : vector<64x384xf32> to vector<8x8x384xf32>
    %c0_7 = arith.constant 0 : index
    %c0_8 = arith.constant 0 : index
    %c0_9 = arith.constant 0 : index
    %11 = vector.load %arg10[%c0_7, %c0_8, %c0_9] : memref<8x8x384xf32, #tpu.memory_space<vmem>>, vector<8x8x384xf32>
    tpu.vector_store %arg10[%c0_7, %c0_8, %c0_9], %10 {strides = array<i32>} : memref<8x8x384xf32, #tpu.memory_space<vmem>>, vector<8x8x384xf32>,
    %c0_10 = arith.constant 0 : index
    %c0_11 = arith.constant 0 : index
    %12 = vector.load %arg5[%c0_10, %c0_11] : memref<128x384xf32, #tpu.memory_space<vmem>>, vector<128x384xf32>
    %c0_12 = arith.constant 0 : index
    %c0_13 = arith.constant 0 : index
    %13 = vector.load %arg6[%c0_12, %c0_13] : memref<1x384xf32, #tpu.memory_space<vmem>>, vector<1x384xf32>
    %14 = vector.shape_cast %13 : vector<1x384xf32> to vector<1x384xf32>
    %15 = vector.broadcast %14 : vector<1x384xf32> to vector<8x384xf32>
    %c0_14 = arith.constant 0 : index
    %c0_15 = arith.constant 0 : index
    %16 = vector.load %arg9[%c0_14, %c0_15] : memref<8x128xf32, #tpu.memory_space<vmem>>, vector<8x128xf32>
    %cst_16 = arith.constant dense<0.000000e+00> : vector<8x384xf32>
    %17 = tpu.matmul %16, %12, %cst_16 {dimension_numbers = #tpu.dot_dimension_numbers<[1], [0], [0], [1], [0, 0, 1, 1], [], []>} : vector<8x128xf32>, vector<128x384xf32>, vector<8x384xf32> -> vector<8x384xf32>
    %18 = arith.addf %17, %15 : vector<8x384xf32>
    %c0_17 = arith.constant 0 : index
    %c0_18 = arith.constant 0 : index
    %c0_19 = arith.constant 0 : index
    %19 = vector.load %arg10[%c0_17, %c0_18, %c0_19] : memref<8x8x384xf32, #tpu.memory_space<vmem>>, vector<1x8x384xf32>
    %20 = vector.shape_cast %19 : vector<1x8x384xf32> to vector<8x384xf32>
    %21 = vector.extract_strided_slice %20 {offsets = [0, 0], sizes = [8, 256], strides = [1, 1]} : vector<8x384xf32> to vector<8x256xf32>
    %22 = vector.extract_strided_slice %18 {offsets = [0, 0], sizes = [8, 256], strides = [1, 1]} : vector<8x384xf32> to vector<8x256xf32>
    %23 = arith.addf %21, %22 : vector<8x256xf32>
    %24 = arith.negf %23 : vector<8x256xf32>
    %25 = math.exp %24 : vector<8x256xf32>
    %cst_20 = arith.constant 1.000000e+00 : f32
    %26 = vector.broadcast %cst_20 : f32 to vector<8x256xf32>
    %27 = arith.addf %26, %25 : vector<8x256xf32>
    %28 = arith.divf %26, %27 : vector<8x256xf32>
    %29 = vector.extract_strided_slice %28 {offsets = [0, 0], sizes = [8, 128], strides = [1, 1]} : vector<8x256xf32> to vector<8x128xf32>
    %30 = vector.extract_strided_slice %28 {offsets = [0, 128], sizes = [8, 128], strides = [1, 1]} : vector<8x256xf32> to vector<8x128xf32>
    %31 = vector.extract_strided_slice %20 {offsets = [0, 256], sizes = [8, 128], strides = [1, 1]} : vector<8x384xf32> to vector<8x128xf32>
    %32 = vector.extract_strided_slice %18 {offsets = [0, 256], sizes = [8, 128], strides = [1, 1]} : vector<8x384xf32> to vector<8x128xf32>
    %33 = arith.mulf %29, %32 : vector<8x128xf32>
    %34 = arith.addf %31, %33 : vector<8x128xf32>
    %35 = math.tanh %34 : vector<8x128xf32>
    %36 = arith.subf %16, %35 : vector<8x128xf32>
    %37 = arith.mulf %30, %36 : vector<8x128xf32>
    %38 = arith.addf %35, %37 : vector<8x128xf32>
    %c0_21 = arith.constant 0 : index
    %c0_22 = arith.constant 0 : index
    %39 = vector.load %arg9[%c0_21, %c0_22] : memref<8x128xf32, #tpu.memory_space<vmem>>, vector<8x128xf32>
    tpu.vector_store %arg9[%c0_21, %c0_22], %38 {strides = array<i32>} : memref<8x128xf32, #tpu.memory_space<vmem>>, vector<8x128xf32>,
    %c0_23 = arith.constant 0 : index
    %c0_24 = arith.constant 0 : index
    %c0_25 = arith.constant 0 : index
    %40 = vector.load %arg7[%c0_23, %c0_24, %c0_25] : memref<8x8x128xf32, #tpu.memory_space<vmem>>, vector<1x8x128xf32>
    %41 = vector.shape_cast %40 : vector<1x8x128xf32> to vector<8x128xf32>
    %42 = vector.shape_cast %38 : vector<8x128xf32> to vector<1x8x128xf32>
    tpu.vector_store %arg7[%c0_23, %c0_24, %c0_25], %42 {strides = array<i32>} : memref<8x8x128xf32, #tpu.memory_space<vmem>>, vector<1x8x128xf32>,
    %c0_26 = arith.constant 0 : index
    %c0_27 = arith.constant 0 : index
    %43 = vector.load %arg9[%c0_26, %c0_27] : memref<8x128xf32, #tpu.memory_space<vmem>>, vector<8x128xf32>
    %cst_28 = arith.constant dense<0.000000e+00> : vector<8x384xf32>
    %44 = tpu.matmul %43, %12, %cst_28 {dimension_numbers = #tpu.dot_dimension_numbers<[1], [0], [0], [1], [0, 0, 1, 1], [], []>} : vector<8x128xf32>, vector<128x384xf32>, vector<8x384xf32> -> vector<8x384xf32>
    %45 = arith.addf %44, %15 : vector<8x384xf32>
    %c1 = arith.constant 1 : index
    %c0_29 = arith.constant 0 : index
    %c0_30 = arith.constant 0 : index
    %46 = vector.load %arg10[%c1, %c0_29, %c0_30] : memref<8x8x384xf32, #tpu.memory_space<vmem>>, vector<1x8x384xf32>
    %47 = vector.shape_cast %46 : vector<1x8x384xf32> to vector<8x384xf32>
    %48 = vector.extract_strided_slice %47 {offsets = [0, 0], sizes = [8, 256], strides = [1, 1]} : vector<8x384xf32> to vector<8x256xf32>
    %49 = vector.extract_strided_slice %45 {offsets = [0, 0], sizes = [8, 256], strides = [1, 1]} : vector<8x384xf32> to vector<8x256xf32>
    %50 = arith.addf %48, %49 : vector<8x256xf32>
    %51 = arith.negf %50 : vector<8x256xf32>
    %52 = math.exp %51 : vector<8x256xf32>
    %cst_31 = arith.constant 1.000000e+00 : f32
    %53 = vector.broadcast %cst_31 : f32 to vector<8x256xf32>
    %54 = arith.addf %53, %52 : vector<8x256xf32>
    %55 = arith.divf %53, %54 : vector<8x256xf32>
    %56 = vector.extract_strided_slice %55 {offsets = [0, 0], sizes = [8, 128], strides = [1, 1]} : vector<8x256xf32> to vector<8x128xf32>
    %57 = vector.extract_strided_slice %55 {offsets = [0, 128], sizes = [8, 128], strides = [1, 1]} : vector<8x256xf32> to vector<8x128xf32>
    %58 = vector.extract_strided_slice %47 {offsets = [0, 256], sizes = [8, 128], strides = [1, 1]} : vector<8x384xf32> to vector<8x128xf32>
    %59 = vector.extract_strided_slice %45 {offsets = [0, 256], sizes = [8, 128], strides = [1, 1]} : vector<8x384xf32> to vector<8x128xf32>
    %60 = arith.mulf %56, %59 : vector<8x128xf32>
    %61 = arith.addf %58, %60 : vector<8x128xf32>
    %62 = math.tanh %61 : vector<8x128xf32>
    %63 = arith.subf %43, %62 : vector<8x128xf32>
    %64 = arith.mulf %57, %63 : vector<8x128xf32>
    %65 = arith.addf %62, %64 : vector<8x128xf32>
    %c0_32 = arith.constant 0 : index
    %c0_33 = arith.constant 0 : index
    %66 = vector.load %arg9[%c0_32, %c0_33] : memref<8x128xf32, #tpu.memory_space<vmem>>, vector<8x128xf32>
    tpu.vector_store %arg9[%c0_32, %c0_33], %65 {strides = array<i32>} : memref<8x128xf32, #tpu.memory_space<vmem>>, vector<8x128xf32>,
    %c1_34 = arith.constant 1 : index
    %c0_35 = arith.constant 0 : index
    %c0_36 = arith.constant 0 : index
    %67 = vector.load %arg7[%c1_34, %c0_35, %c0_36] : memref<8x8x128xf32, #tpu.memory_space<vmem>>, vector<1x8x128xf32>
    %68 = vector.shape_cast %67 : vector<1x8x128xf32> to vector<8x128xf32>
    %69 = vector.shape_cast %65 : vector<8x128xf32> to vector<1x8x128xf32>
    tpu.vector_store %arg7[%c1_34, %c0_35, %c0_36], %69 {strides = array<i32>} : memref<8x8x128xf32, #tpu.memory_space<vmem>>, vector<1x8x128xf32>,
    %c0_37 = arith.constant 0 : index
    %c0_38 = arith.constant 0 : index
    %70 = vector.load %arg9[%c0_37, %c0_38] : memref<8x128xf32, #tpu.memory_space<vmem>>, vector<8x128xf32>
    %cst_39 = arith.constant dense<0.000000e+00> : vector<8x384xf32>
    %71 = tpu.matmul %70, %12, %cst_39 {dimension_numbers = #tpu.dot_dimension_numbers<[1], [0], [0], [1], [0, 0, 1, 1], [], []>} : vector<8x128xf32>, vector<128x384xf32>, vector<8x384xf32> -> vector<8x384xf32>
    %72 = arith.addf %71, %15 : vector<8x384xf32>
    %c2 = arith.constant 2 : index
    %c0_40 = arith.constant 0 : index
    %c0_41 = arith.constant 0 : index
    %73 = vector.load %arg10[%c2, %c0_40, %c0_41] : memref<8x8x384xf32, #tpu.memory_space<vmem>>, vector<1x8x384xf32>
    %74 = vector.shape_cast %73 : vector<1x8x384xf32> to vector<8x384xf32>
    %75 = vector.extract_strided_slice %74 {offsets = [0, 0], sizes = [8, 256], strides = [1, 1]} : vector<8x384xf32> to vector<8x256xf32>
    %76 = vector.extract_strided_slice %72 {offsets = [0, 0], sizes = [8, 256], strides = [1, 1]} : vector<8x384xf32> to vector<8x256xf32>
    %77 = arith.addf %75, %76 : vector<8x256xf32>
    %78 = arith.negf %77 : vector<8x256xf32>
    %79 = math.exp %78 : vector<8x256xf32>
    %cst_42 = arith.constant 1.000000e+00 : f32
    %80 = vector.broadcast %cst_42 : f32 to vector<8x256xf32>
    %81 = arith.addf %80, %79 : vector<8x256xf32>
    %82 = arith.divf %80, %81 : vector<8x256xf32>
    %83 = vector.extract_strided_slice %82 {offsets = [0, 0], sizes = [8, 128], strides = [1, 1]} : vector<8x256xf32> to vector<8x128xf32>
    %84 = vector.extract_strided_slice %82 {offsets = [0, 128], sizes = [8, 128], strides = [1, 1]} : vector<8x256xf32> to vector<8x128xf32>
    %85 = vector.extract_strided_slice %74 {offsets = [0, 256], sizes = [8, 128], strides = [1, 1]} : vector<8x384xf32> to vector<8x128xf32>
    %86 = vector.extract_strided_slice %72 {offsets = [0, 256], sizes = [8, 128], strides = [1, 1]} : vector<8x384xf32> to vector<8x128xf32>
    %87 = arith.mulf %83, %86 : vector<8x128xf32>
    %88 = arith.addf %85, %87 : vector<8x128xf32>
    %89 = math.tanh %88 : vector<8x128xf32>
    %90 = arith.subf %70, %89 : vector<8x128xf32>
    %91 = arith.mulf %84, %90 : vector<8x128xf32>
    %92 = arith.addf %89, %91 : vector<8x128xf32>
    %c0_43 = arith.constant 0 : index
    %c0_44 = arith.constant 0 : index
    %93 = vector.load %arg9[%c0_43, %c0_44] : memref<8x128xf32, #tpu.memory_space<vmem>>, vector<8x128xf32>
    tpu.vector_store %arg9[%c0_43, %c0_44], %92 {strides = array<i32>} : memref<8x128xf32, #tpu.memory_space<vmem>>, vector<8x128xf32>,
    %c2_45 = arith.constant 2 : index
    %c0_46 = arith.constant 0 : index
    %c0_47 = arith.constant 0 : index
    %94 = vector.load %arg7[%c2_45, %c0_46, %c0_47] : memref<8x8x128xf32, #tpu.memory_space<vmem>>, vector<1x8x128xf32>
    %95 = vector.shape_cast %94 : vector<1x8x128xf32> to vector<8x128xf32>
    %96 = vector.shape_cast %92 : vector<8x128xf32> to vector<1x8x128xf32>
    tpu.vector_store %arg7[%c2_45, %c0_46, %c0_47], %96 {strides = array<i32>} : memref<8x8x128xf32, #tpu.memory_space<vmem>>, vector<1x8x128xf32>,
    %c0_48 = arith.constant 0 : index
    %c0_49 = arith.constant 0 : index
    %97 = vector.load %arg9[%c0_48, %c0_49] : memref<8x128xf32, #tpu.memory_space<vmem>>, vector<8x128xf32>
    %cst_50 = arith.constant dense<0.000000e+00> : vector<8x384xf32>
    %98 = tpu.matmul %97, %12, %cst_50 {dimension_numbers = #tpu.dot_dimension_numbers<[1], [0], [0], [1], [0, 0, 1, 1], [], []>} : vector<8x128xf32>, vector<128x384xf32>, vector<8x384xf32> -> vector<8x384xf32>
    %99 = arith.addf %98, %15 : vector<8x384xf32>
    %c3 = arith.constant 3 : index
    %c0_51 = arith.constant 0 : index
    %c0_52 = arith.constant 0 : index
    %100 = vector.load %arg10[%c3, %c0_51, %c0_52] : memref<8x8x384xf32, #tpu.memory_space<vmem>>, vector<1x8x384xf32>
    %101 = vector.shape_cast %100 : vector<1x8x384xf32> to vector<8x384xf32>
    %102 = vector.extract_strided_slice %101 {offsets = [0, 0], sizes = [8, 256], strides = [1, 1]} : vector<8x384xf32> to vector<8x256xf32>
    %103 = vector.extract_strided_slice %99 {offsets = [0, 0], sizes = [8, 256], strides = [1, 1]} : vector<8x384xf32> to vector<8x256xf32>
    %104 = arith.addf %102, %103 : vector<8x256xf32>
    %105 = arith.negf %104 : vector<8x256xf32>
    %106 = math.exp %105 : vector<8x256xf32>
    %cst_53 = arith.constant 1.000000e+00 : f32
    %107 = vector.broadcast %cst_53 : f32 to vector<8x256xf32>
    %108 = arith.addf %107, %106 : vector<8x256xf32>
    %109 = arith.divf %107, %108 : vector<8x256xf32>
    %110 = vector.extract_strided_slice %109 {offsets = [0, 0], sizes = [8, 128], strides = [1, 1]} : vector<8x256xf32> to vector<8x128xf32>
    %111 = vector.extract_strided_slice %109 {offsets = [0, 128], sizes = [8, 128], strides = [1, 1]} : vector<8x256xf32> to vector<8x128xf32>
    %112 = vector.extract_strided_slice %101 {offsets = [0, 256], sizes = [8, 128], strides = [1, 1]} : vector<8x384xf32> to vector<8x128xf32>
    %113 = vector.extract_strided_slice %99 {offsets = [0, 256], sizes = [8, 128], strides = [1, 1]} : vector<8x384xf32> to vector<8x128xf32>
    %114 = arith.mulf %110, %113 : vector<8x128xf32>
    %115 = arith.addf %112, %114 : vector<8x128xf32>
    %116 = math.tanh %115 : vector<8x128xf32>
    %117 = arith.subf %97, %116 : vector<8x128xf32>
    %118 = arith.mulf %111, %117 : vector<8x128xf32>
    %119 = arith.addf %116, %118 : vector<8x128xf32>
    %c0_54 = arith.constant 0 : index
    %c0_55 = arith.constant 0 : index
    %120 = vector.load %arg9[%c0_54, %c0_55] : memref<8x128xf32, #tpu.memory_space<vmem>>, vector<8x128xf32>
    tpu.vector_store %arg9[%c0_54, %c0_55], %119 {strides = array<i32>} : memref<8x128xf32, #tpu.memory_space<vmem>>, vector<8x128xf32>,
    %c3_56 = arith.constant 3 : index
    %c0_57 = arith.constant 0 : index
    %c0_58 = arith.constant 0 : index
    %121 = vector.load %arg7[%c3_56, %c0_57, %c0_58] : memref<8x8x128xf32, #tpu.memory_space<vmem>>, vector<1x8x128xf32>
    %122 = vector.shape_cast %121 : vector<1x8x128xf32> to vector<8x128xf32>
    %123 = vector.shape_cast %119 : vector<8x128xf32> to vector<1x8x128xf32>
    tpu.vector_store %arg7[%c3_56, %c0_57, %c0_58], %123 {strides = array<i32>} : memref<8x8x128xf32, #tpu.memory_space<vmem>>, vector<1x8x128xf32>,
    %c0_59 = arith.constant 0 : index
    %c0_60 = arith.constant 0 : index
    %124 = vector.load %arg9[%c0_59, %c0_60] : memref<8x128xf32, #tpu.memory_space<vmem>>, vector<8x128xf32>
    %cst_61 = arith.constant dense<0.000000e+00> : vector<8x384xf32>
    %125 = tpu.matmul %124, %12, %cst_61 {dimension_numbers = #tpu.dot_dimension_numbers<[1], [0], [0], [1], [0, 0, 1, 1], [], []>} : vector<8x128xf32>, vector<128x384xf32>, vector<8x384xf32> -> vector<8x384xf32>
    %126 = arith.addf %125, %15 : vector<8x384xf32>
    %c4 = arith.constant 4 : index
    %c0_62 = arith.constant 0 : index
    %c0_63 = arith.constant 0 : index
    %127 = vector.load %arg10[%c4, %c0_62, %c0_63] : memref<8x8x384xf32, #tpu.memory_space<vmem>>, vector<1x8x384xf32>
    %128 = vector.shape_cast %127 : vector<1x8x384xf32> to vector<8x384xf32>
    %129 = vector.extract_strided_slice %128 {offsets = [0, 0], sizes = [8, 256], strides = [1, 1]} : vector<8x384xf32> to vector<8x256xf32>
    %130 = vector.extract_strided_slice %126 {offsets = [0, 0], sizes = [8, 256], strides = [1, 1]} : vector<8x384xf32> to vector<8x256xf32>
    %131 = arith.addf %129, %130 : vector<8x256xf32>
    %132 = arith.negf %131 : vector<8x256xf32>
    %133 = math.exp %132 : vector<8x256xf32>
    %cst_64 = arith.constant 1.000000e+00 : f32
    %134 = vector.broadcast %cst_64 : f32 to vector<8x256xf32>
    %135 = arith.addf %134, %133 : vector<8x256xf32>
    %136 = arith.divf %134, %135 : vector<8x256xf32>
    %137 = vector.extract_strided_slice %136 {offsets = [0, 0], sizes = [8, 128], strides = [1, 1]} : vector<8x256xf32> to vector<8x128xf32>
    %138 = vector.extract_strided_slice %136 {offsets = [0, 128], sizes = [8, 128], strides = [1, 1]} : vector<8x256xf32> to vector<8x128xf32>
    %139 = vector.extract_strided_slice %128 {offsets = [0, 256], sizes = [8, 128], strides = [1, 1]} : vector<8x384xf32> to vector<8x128xf32>
    %140 = vector.extract_strided_slice %126 {offsets = [0, 256], sizes = [8, 128], strides = [1, 1]} : vector<8x384xf32> to vector<8x128xf32>
    %141 = arith.mulf %137, %140 : vector<8x128xf32>
    %142 = arith.addf %139, %141 : vector<8x128xf32>
    %143 = math.tanh %142 : vector<8x128xf32>
    %144 = arith.subf %124, %143 : vector<8x128xf32>
    %145 = arith.mulf %138, %144 : vector<8x128xf32>
    %146 = arith.addf %143, %145 : vector<8x128xf32>
    %c0_65 = arith.constant 0 : index
    %c0_66 = arith.constant 0 : index
    %147 = vector.load %arg9[%c0_65, %c0_66] : memref<8x128xf32, #tpu.memory_space<vmem>>, vector<8x128xf32>
    tpu.vector_store %arg9[%c0_65, %c0_66], %146 {strides = array<i32>} : memref<8x128xf32, #tpu.memory_space<vmem>>, vector<8x128xf32>,
    %c4_67 = arith.constant 4 : index
    %c0_68 = arith.constant 0 : index
    %c0_69 = arith.constant 0 : index
    %148 = vector.load %arg7[%c4_67, %c0_68, %c0_69] : memref<8x8x128xf32, #tpu.memory_space<vmem>>, vector<1x8x128xf32>
    %149 = vector.shape_cast %148 : vector<1x8x128xf32> to vector<8x128xf32>
    %150 = vector.shape_cast %146 : vector<8x128xf32> to vector<1x8x128xf32>
    tpu.vector_store %arg7[%c4_67, %c0_68, %c0_69], %150 {strides = array<i32>} : memref<8x8x128xf32, #tpu.memory_space<vmem>>, vector<1x8x128xf32>,
    %c0_70 = arith.constant 0 : index
    %c0_71 = arith.constant 0 : index
    %151 = vector.load %arg9[%c0_70, %c0_71] : memref<8x128xf32, #tpu.memory_space<vmem>>, vector<8x128xf32>
    %cst_72 = arith.constant dense<0.000000e+00> : vector<8x384xf32>
    %152 = tpu.matmul %151, %12, %cst_72 {dimension_numbers = #tpu.dot_dimension_numbers<[1], [0], [0], [1], [0, 0, 1, 1], [], []>} : vector<8x128xf32>, vector<128x384xf32>, vector<8x384xf32> -> vector<8x384xf32>
    %153 = arith.addf %152, %15 : vector<8x384xf32>
    %c5 = arith.constant 5 : index
    %c0_73 = arith.constant 0 : index
    %c0_74 = arith.constant 0 : index
    %154 = vector.load %arg10[%c5, %c0_73, %c0_74] : memref<8x8x384xf32, #tpu.memory_space<vmem>>, vector<1x8x384xf32>
    %155 = vector.shape_cast %154 : vector<1x8x384xf32> to vector<8x384xf32>
    %156 = vector.extract_strided_slice %155 {offsets = [0, 0], sizes = [8, 256], strides = [1, 1]} : vector<8x384xf32> to vector<8x256xf32>
    %157 = vector.extract_strided_slice %153 {offsets = [0, 0], sizes = [8, 256], strides = [1, 1]} : vector<8x384xf32> to vector<8x256xf32>
    %158 = arith.addf %156, %157 : vector<8x256xf32>
    %159 = arith.negf %158 : vector<8x256xf32>
    %160 = math.exp %159 : vector<8x256xf32>
    %cst_75 = arith.constant 1.000000e+00 : f32
    %161 = vector.broadcast %cst_75 : f32 to vector<8x256xf32>
    %162 = arith.addf %161, %160 : vector<8x256xf32>
    %163 = arith.divf %161, %162 : vector<8x256xf32>
    %164 = vector.extract_strided_slice %163 {offsets = [0, 0], sizes = [8, 128], strides = [1, 1]} : vector<8x256xf32> to vector<8x128xf32>
    %165 = vector.extract_strided_slice %163 {offsets = [0, 128], sizes = [8, 128], strides = [1, 1]} : vector<8x256xf32> to vector<8x128xf32>
    %166 = vector.extract_strided_slice %155 {offsets = [0, 256], sizes = [8, 128], strides = [1, 1]} : vector<8x384xf32> to vector<8x128xf32>
    %167 = vector.extract_strided_slice %153 {offsets = [0, 256], sizes = [8, 128], strides = [1, 1]} : vector<8x384xf32> to vector<8x128xf32>
    %168 = arith.mulf %164, %167 : vector<8x128xf32>
    %169 = arith.addf %166, %168 : vector<8x128xf32>
    %170 = math.tanh %169 : vector<8x128xf32>
    %171 = arith.subf %151, %170 : vector<8x128xf32>
    %172 = arith.mulf %165, %171 : vector<8x128xf32>
    %173 = arith.addf %170, %172 : vector<8x128xf32>
    %c0_76 = arith.constant 0 : index
    %c0_77 = arith.constant 0 : index
    %174 = vector.load %arg9[%c0_76, %c0_77] : memref<8x128xf32, #tpu.memory_space<vmem>>, vector<8x128xf32>
    tpu.vector_store %arg9[%c0_76, %c0_77], %173 {strides = array<i32>} : memref<8x128xf32, #tpu.memory_space<vmem>>, vector<8x128xf32>,
    %c5_78 = arith.constant 5 : index
    %c0_79 = arith.constant 0 : index
    %c0_80 = arith.constant 0 : index
    %175 = vector.load %arg7[%c5_78, %c0_79, %c0_80] : memref<8x8x128xf32, #tpu.memory_space<vmem>>, vector<1x8x128xf32>
    %176 = vector.shape_cast %175 : vector<1x8x128xf32> to vector<8x128xf32>
    %177 = vector.shape_cast %173 : vector<8x128xf32> to vector<1x8x128xf32>
    tpu.vector_store %arg7[%c5_78, %c0_79, %c0_80], %177 {strides = array<i32>} : memref<8x8x128xf32, #tpu.memory_space<vmem>>, vector<1x8x128xf32>,
    %c0_81 = arith.constant 0 : index
    %c0_82 = arith.constant 0 : index
    %178 = vector.load %arg9[%c0_81, %c0_82] : memref<8x128xf32, #tpu.memory_space<vmem>>, vector<8x128xf32>
    %cst_83 = arith.constant dense<0.000000e+00> : vector<8x384xf32>
    %179 = tpu.matmul %178, %12, %cst_83 {dimension_numbers = #tpu.dot_dimension_numbers<[1], [0], [0], [1], [0, 0, 1, 1], [], []>} : vector<8x128xf32>, vector<128x384xf32>, vector<8x384xf32> -> vector<8x384xf32>
    %180 = arith.addf %179, %15 : vector<8x384xf32>
    %c6 = arith.constant 6 : index
    %c0_84 = arith.constant 0 : index
    %c0_85 = arith.constant 0 : index
    %181 = vector.load %arg10[%c6, %c0_84, %c0_85] : memref<8x8x384xf32, #tpu.memory_space<vmem>>, vector<1x8x384xf32>
    %182 = vector.shape_cast %181 : vector<1x8x384xf32> to vector<8x384xf32>
    %183 = vector.extract_strided_slice %182 {offsets = [0, 0], sizes = [8, 256], strides = [1, 1]} : vector<8x384xf32> to vector<8x256xf32>
    %184 = vector.extract_strided_slice %180 {offsets = [0, 0], sizes = [8, 256], strides = [1, 1]} : vector<8x384xf32> to vector<8x256xf32>
    %185 = arith.addf %183, %184 : vector<8x256xf32>
    %186 = arith.negf %185 : vector<8x256xf32>
    %187 = math.exp %186 : vector<8x256xf32>
    %cst_86 = arith.constant 1.000000e+00 : f32
    %188 = vector.broadcast %cst_86 : f32 to vector<8x256xf32>
    %189 = arith.addf %188, %187 : vector<8x256xf32>
    %190 = arith.divf %188, %189 : vector<8x256xf32>
    %191 = vector.extract_strided_slice %190 {offsets = [0, 0], sizes = [8, 128], strides = [1, 1]} : vector<8x256xf32> to vector<8x128xf32>
    %192 = vector.extract_strided_slice %190 {offsets = [0, 128], sizes = [8, 128], strides = [1, 1]} : vector<8x256xf32> to vector<8x128xf32>
    %193 = vector.extract_strided_slice %182 {offsets = [0, 256], sizes = [8, 128], strides = [1, 1]} : vector<8x384xf32> to vector<8x128xf32>
    %194 = vector.extract_strided_slice %180 {offsets = [0, 256], sizes = [8, 128], strides = [1, 1]} : vector<8x384xf32> to vector<8x128xf32>
    %195 = arith.mulf %191, %194 : vector<8x128xf32>
    %196 = arith.addf %193, %195 : vector<8x128xf32>
    %197 = math.tanh %196 : vector<8x128xf32>
    %198 = arith.subf %178, %197 : vector<8x128xf32>
    %199 = arith.mulf %192, %198 : vector<8x128xf32>
    %200 = arith.addf %197, %199 : vector<8x128xf32>
    %c0_87 = arith.constant 0 : index
    %c0_88 = arith.constant 0 : index
    %201 = vector.load %arg9[%c0_87, %c0_88] : memref<8x128xf32, #tpu.memory_space<vmem>>, vector<8x128xf32>
    tpu.vector_store %arg9[%c0_87, %c0_88], %200 {strides = array<i32>} : memref<8x128xf32, #tpu.memory_space<vmem>>, vector<8x128xf32>,
    %c6_89 = arith.constant 6 : index
    %c0_90 = arith.constant 0 : index
    %c0_91 = arith.constant 0 : index
    %202 = vector.load %arg7[%c6_89, %c0_90, %c0_91] : memref<8x8x128xf32, #tpu.memory_space<vmem>>, vector<1x8x128xf32>
    %203 = vector.shape_cast %202 : vector<1x8x128xf32> to vector<8x128xf32>
    %204 = vector.shape_cast %200 : vector<8x128xf32> to vector<1x8x128xf32>
    tpu.vector_store %arg7[%c6_89, %c0_90, %c0_91], %204 {strides = array<i32>} : memref<8x8x128xf32, #tpu.memory_space<vmem>>, vector<1x8x128xf32>,
    %c0_92 = arith.constant 0 : index
    %c0_93 = arith.constant 0 : index
    %205 = vector.load %arg9[%c0_92, %c0_93] : memref<8x128xf32, #tpu.memory_space<vmem>>, vector<8x128xf32>
    %cst_94 = arith.constant dense<0.000000e+00> : vector<8x384xf32>
    %206 = tpu.matmul %205, %12, %cst_94 {dimension_numbers = #tpu.dot_dimension_numbers<[1], [0], [0], [1], [0, 0, 1, 1], [], []>} : vector<8x128xf32>, vector<128x384xf32>, vector<8x384xf32> -> vector<8x384xf32>
    %207 = arith.addf %206, %15 : vector<8x384xf32>
    %c7 = arith.constant 7 : index
    %c0_95 = arith.constant 0 : index
    %c0_96 = arith.constant 0 : index
    %208 = vector.load %arg10[%c7, %c0_95, %c0_96] : memref<8x8x384xf32, #tpu.memory_space<vmem>>, vector<1x8x384xf32>
    %209 = vector.shape_cast %208 : vector<1x8x384xf32> to vector<8x384xf32>
    %210 = vector.extract_strided_slice %209 {offsets = [0, 0], sizes = [8, 256], strides = [1, 1]} : vector<8x384xf32> to vector<8x256xf32>
    %211 = vector.extract_strided_slice %207 {offsets = [0, 0], sizes = [8, 256], strides = [1, 1]} : vector<8x384xf32> to vector<8x256xf32>
    %212 = arith.addf %210, %211 : vector<8x256xf32>
    %213 = arith.negf %212 : vector<8x256xf32>
    %214 = math.exp %213 : vector<8x256xf32>
    %cst_97 = arith.constant 1.000000e+00 : f32
    %215 = vector.broadcast %cst_97 : f32 to vector<8x256xf32>
    %216 = arith.addf %215, %214 : vector<8x256xf32>
    %217 = arith.divf %215, %216 : vector<8x256xf32>
    %218 = vector.extract_strided_slice %217 {offsets = [0, 0], sizes = [8, 128], strides = [1, 1]} : vector<8x256xf32> to vector<8x128xf32>
    %219 = vector.extract_strided_slice %217 {offsets = [0, 128], sizes = [8, 128], strides = [1, 1]} : vector<8x256xf32> to vector<8x128xf32>
    %220 = vector.extract_strided_slice %209 {offsets = [0, 256], sizes = [8, 128], strides = [1, 1]} : vector<8x384xf32> to vector<8x128xf32>
    %221 = vector.extract_strided_slice %207 {offsets = [0, 256], sizes = [8, 128], strides = [1, 1]} : vector<8x384xf32> to vector<8x128xf32>
    %222 = arith.mulf %218, %221 : vector<8x128xf32>
    %223 = arith.addf %220, %222 : vector<8x128xf32>
    %224 = math.tanh %223 : vector<8x128xf32>
    %225 = arith.subf %205, %224 : vector<8x128xf32>
    %226 = arith.mulf %219, %225 : vector<8x128xf32>
    %227 = arith.addf %224, %226 : vector<8x128xf32>
    %c0_98 = arith.constant 0 : index
    %c0_99 = arith.constant 0 : index
    %228 = vector.load %arg9[%c0_98, %c0_99] : memref<8x128xf32, #tpu.memory_space<vmem>>, vector<8x128xf32>
    tpu.vector_store %arg9[%c0_98, %c0_99], %227 {strides = array<i32>} : memref<8x128xf32, #tpu.memory_space<vmem>>, vector<8x128xf32>,
    %c7_100 = arith.constant 7 : index
    %c0_101 = arith.constant 0 : index
    %c0_102 = arith.constant 0 : index
    %229 = vector.load %arg7[%c7_100, %c0_101, %c0_102] : memref<8x8x128xf32, #tpu.memory_space<vmem>>, vector<1x8x128xf32>
    %230 = vector.shape_cast %229 : vector<1x8x128xf32> to vector<8x128xf32>
    %231 = vector.shape_cast %227 : vector<8x128xf32> to vector<1x8x128xf32>
    tpu.vector_store %arg7[%c7_100, %c0_101, %c0_102], %231 {strides = array<i32>} : memref<8x8x128xf32, #tpu.memory_space<vmem>>, vector<1x8x128xf32>,
    %c0_i32_103 = arith.constant 0 : i32
    %232 = arith.cmpi eq, %arg0, %c0_i32_103 : i32
    %233 = arith.extui %232 : i1 to i32
    %c0_i32_104 = arith.constant 0 : i32
    %234 = arith.cmpi ne, %233, %c0_i32_104 : i32
    scf.if %234 {
      %c0_105 = arith.constant 0 : index
      %c0_106 = arith.constant 0 : index
      %235 = vector.load %arg9[%c0_105, %c0_106] : memref<8x128xf32, #tpu.memory_space<vmem>>, vector<8x128xf32>
      %c0_107 = arith.constant 0 : index
      %c0_108 = arith.constant 0 : index
      %236 = vector.load %arg8[%c0_107, %c0_108] : memref<8x128xf32, #tpu.memory_space<vmem>>, vector<8x128xf32>
      tpu.vector_store %arg8[%c0_107, %c0_108], %235 {strides = array<i32>} : memref<8x128xf32, #tpu.memory_space<vmem>>, vector<8x128xf32>,
    } else {
    }
    return
  }
  func.func @transform_0(%arg0: i32) -> (i32, i32, i32) {
    %c0_i32 = arith.constant 0 : i32
    %c0_i32_0 = arith.constant 0 : i32
    %c0_i32_1 = arith.constant 0 : i32
    return %arg0, %c0_i32, %c0_i32_0 : i32, i32, i32
  }
  func.func @transform_1(%arg0: i32) -> (i32, i32) {
    %c0_i32 = arith.constant 0 : i32
    %c0_i32_0 = arith.constant 0 : i32
    %c0_i32_1 = arith.constant 0 : i32
    return %c0_i32, %c0_i32_0 : i32, i32
  }
  func.func @transform_2(%arg0: i32) -> (i32, i32) {
    %c0_i32 = arith.constant 0 : i32
    %c0_i32_0 = arith.constant 0 : i32
    %c0_i32_1 = arith.constant 0 : i32
    return %c0_i32, %c0_i32_0 : i32, i32
  }
  func.func @transform_3(%arg0: i32) -> (i32, i32) {
    %c0_i32 = arith.constant 0 : i32
    %c0_i32_0 = arith.constant 0 : i32
    %c0_i32_1 = arith.constant 0 : i32
    return %c0_i32, %c0_i32_0 : i32, i32
  }
  func.func @transform_4(%arg0: i32) -> (i32, i32) {
    %c0_i32 = arith.constant 0 : i32
    %c0_i32_0 = arith.constant 0 : i32
    %c0_i32_1 = arith.constant 0 : i32
    return %c0_i32, %c0_i32_0 : i32, i32
  }
  func.func @transform_5(%arg0: i32) -> (i32, i32) {
    %c0_i32 = arith.constant 0 : i32
    %c0_i32_0 = arith.constant 0 : i32
    %c0_i32_1 = arith.constant 0 : i32
    return %c0_i32, %c0_i32_0 : i32, i32
  }
  func.func @transform_6(%arg0: i32) -> (i32, i32, i32) {
    %c0_i32 = arith.constant 0 : i32
    %c0_i32_0 = arith.constant 0 : i32
    %c0_i32_1 = arith.constant 0 : i32
    return %arg0, %c0_i32, %c0_i32_0 : i32, i32, i32
  }
  func.func @transform_7(%arg0: i32) -> (i32, i32) {
    %c0_i32 = arith.constant 0 : i32
    %c0_i32_0 = arith.constant 0 : i32
    %c0_i32_1 = arith.constant 0 : i32
    return %c0_i32, %c0_i32_0 : i32, i32
  }
}

</mosaic_0001>

<bundles_post_ra>
// kernel: tpu_custom_call.1
= control target key start
LH: loop header
LB: loop body
LE: loop exit
PB: predicated region body
PF: predicated region fallthrough
CT: control target
= control target key end

     0   :  { %13 = vsyncpa [#allocation5], 0  ;;  %s3719_s0 = inlined_call_operand.hbm [shape: f32[8,8,128], index: 0, kind: input, shape index: {}]   ;;  %s3720_s1 = inlined_call_operand.hbm [shape: f32[8,128], index: 1, kind: input, shape index: {}]   ;;  %s3721_s2 = inlined_call_operand.hbm [shape: f32[128,384], index: 2, kind: input, shape index: {}]   ;;  %s3722_s3 = inlined_call_operand.vmem [shape: f32[1,384], index: 3, kind: input, shape index: {}]   ;;  %s3723_s4 = inlined_call_operand.hbm [shape: f32[128,384], index: 4, kind: input, shape index: {}]   ;;  %s3724_s5 = inlined_call_operand.vmem [shape: f32[1,384], index: 5, kind: input, shape index: {}]   ;;  %s3725_s6 = inlined_call_operand.hbm [shape: f32[8,8,128], index: 6, kind: output, shape index: {0}]   ;;  %s3726_s7 = inlined_call_operand.hbm [shape: f32[8,128], index: 7, kind: output, shape index: {1}]  }
   0x1   :  { %14 = vsyncpa [#allocation8], 0 }
   0x2   :  { %15 = vsyncpa [#allocation11], 0 }
   0x3   :  { %16 = vsyncpa [#allocation6], 0 }
   0x4   :  { %17 = vsyncpa [#allocation14], 0  ;;  %s3149_s24 = smov [#allocation7]   ;;  %s3150_s26 = smov [#allocation4]  }
   0x5   :  { %s36_s25 = sshll.u32 %s3149_s24, 4  ;;  %s23_s27 = sshll.u32 %s3150_s26, 4  ;;  %s37_s25 = int_to_ptr.vmem [resolvable:$true] %s36_s25  ;;  %s3202_s27 = int_to_ptr.vmem [resolvable:$true] %s23_s27 }
   0x6   :  { %s3007_s30 = scalar_lea.hbm %s3720_s1, 128 }
   0x7   :  { %p3008_p0 = scmp.ne.s32.totalorder %s3720_s1, %s3007_s30  ;;  %p3011_p1 = scmp.lt.u32.totalorder %s3007_s30, %s3720_s1 }
   0x9   :  { %p3013_p2 = pnand %p3011_p1, %p3008_p0 }
   0xb   :  { %3016 = shalt.err (!%p3013_p2)
}
   0xc   :  { %s3017_s12 = scalar_lea.vmem %s37_s25, 128  ;;  %p3022_p4 = scmp.lt.s32.totalorder %s37_s25, %s37_s25 }
   0xd   :  { %p3018_p3 = scmp.ne.s32.totalorder %s37_s25, %s3017_s12  ;;  %p3023_p5 = scmp.lt.s32.totalorder %s3017_s12, %s3017_s12 }
   0xf   :  { %p3024_p6 = por %p3023_p5, %p3022_p4 }
  0x11   :  { %p3025_p7 = pnand %p3024_p6, %p3018_p3 }
  0x13   :  { %3028 = shalt.err (!%p3025_p7)
}
  0x14   :  { %39 = dma.hbm_to_vmem [thread:$0]  %s3720_s1, 128, %s37_s25, [#allocation8]  }
  0x15   :  { %s3029_s17 = scalar_lea.hbm %s3719_s0, 1024 }
  0x16   :  { %p3030_p8 = scmp.ne.s32.totalorder %s3719_s0, %s3029_s17  ;;  %p3033_p9 = scmp.lt.u32.totalorder %s3029_s17, %s3719_s0 }
  0x18   :  { %p3035_p10 = pnand %p3033_p9, %p3030_p8 }
  0x1a   :  { %3038 = shalt.err (!%p3035_p10)
}
  0x1b   :  { %s3039_s22 = scalar_lea.vmem %s3202_s27, 1024  ;;  %p3044_p12 = scmp.lt.s32.totalorder %s3202_s27, %s3202_s27 }
  0x1c   :  { %p3040_p11 = scmp.ne.s32.totalorder %s3202_s27, %s3039_s22  ;;  %p3045_p13 = scmp.lt.s32.totalorder %s3039_s22, %s3039_s22 }
  0x1e   :  { %p3046_p0 = por %p3045_p13, %p3044_p12 }
  0x20   :  { %p3047_p1 = pnand %p3046_p0, %p3040_p11 }
  0x22   :  { %3050 = shalt.err (!%p3047_p1)
}
  0x23   :  { %s3151_s1 = smov 128   ;;  %s3152_s23 = smov 8  }
  0x24   :  { %29 = dma.hbm_to_vmem [thread:$0]  %s3719_s0, 1024, %s3202_s27, [#allocation5], %s3151_s1, %s3151_s1, %s3152_s23  }
  0x25   :  { %s3153_s26 = smov [#allocation9]   ;;  %s3051_s8 = scalar_lea.hbm %s3721_s2, 6144 }
  0x26   :  { %s45_s28 = sshll.u32 %s3153_s26, 4  ;;  %p3052_p2 = scmp.ne.s32.totalorder %s3721_s2, %s3051_s8  ;;  %s46_s28 = int_to_ptr.vmem [resolvable:$true] %s45_s28 }
  0x27   :  { %p3055_p3 = scmp.lt.u32.totalorder %s3051_s8, %s3721_s2 }
  0x29   :  { %p3057_p4 = pnand %p3055_p3, %p3052_p2 }
  0x2b   :  { %3060 = shalt.err (!%p3057_p4)
}
  0x2c   :  { %s3061_s13 = scalar_lea.vmem %s46_s28, 6144  ;;  %p3066_p6 = scmp.lt.s32.totalorder %s46_s28, %s46_s28 }
  0x2d   :  { %p3062_p5 = scmp.ne.s32.totalorder %s46_s28, %s3061_s13  ;;  %p3067_p7 = scmp.lt.s32.totalorder %s3061_s13, %s3061_s13 }
  0x2f   :  { %p3068_p8 = por %p3067_p7, %p3066_p6 }
  0x31   :  { %p3069_p9 = pnand %p3068_p8, %p3062_p5 }
  0x33   :  { %3072 = shalt.err (!%p3069_p9)
}
  0x34   :  { %s3154_s0 = smov 384   ;;  %s3155_s27 = smov 24  }
  0x35   :  { %51 = dma.hbm_to_vmem [thread:$0]  %s3721_s2, 6144, %s46_s28, [#allocation8], %s3154_s0, %s3154_s0, %s3155_s27  }
  0x36   :  { %s3156_s16 = smov [#allocation10]   ;;  %s3073_s20 = scalar_lea.hbm %s3723_s4, 6144 }
  0x37   :  { %s59_s17 = sshll.u32 %s3156_s16, 4  ;;  %p3074_p10 = scmp.ne.s32.totalorder %s3723_s4, %s3073_s20  ;;  %s60_s17 = int_to_ptr.vmem [resolvable:$true] %s59_s17 }
  0x38   :  { %p3077_p11 = scmp.lt.u32.totalorder %s3073_s20, %s3723_s4 }
  0x3a   :  { %p3079_p12 = pnand %p3077_p11, %p3074_p10 }
  0x3c   :  { %3082 = shalt.err (!%p3079_p12)
}
  0x3d   :  { %s3083_s26 = scalar_lea.vmem %s60_s17, 6144  ;;  %p3088_p0 = scmp.lt.s32.totalorder %s60_s17, %s60_s17 }
  0x3e   :  { %p3084_p13 = scmp.ne.s32.totalorder %s60_s17, %s3083_s26  ;;  %p3089_p1 = scmp.lt.s32.totalorder %s3083_s26, %s3083_s26 }
  0x40   :  { %p3090_p2 = por %p3089_p1, %p3088_p0 }
  0x42   :  { %p3091_p3 = pnand %p3090_p2, %p3084_p13 }
  0x44   :  { %3094 = shalt.err (!%p3091_p3)
}
  0x45   :  { %65 = dma.hbm_to_vmem [thread:$0]  %s3723_s4, 6144, %s60_s17, [#allocation11], %s3154_s0, %s3154_s0, %s3155_s27  }
  0x46   :  { %3139 = dma.done.wait [#allocation5], 1024  }
  0x47   :  { %3140 = vsyncadd [#allocation5], 4294966272 }
  0x48   :  { %3141 = dma.done.wait [#allocation8], 6272  }
  0x49   :  { %3142 = vsyncadd [#allocation8], 4294961024 }
  0x4a   :  { %3143 = dma.done.wait [#allocation11], 6144  }
  0x4b   :  { %3144 = vsyncadd [#allocation11], 4294961152  ;;  %v3157_v0 = vmov 0.0   ;;  %v95_v1 = vld [vmem:[#allocation9 + $0x8] sm:$0xff]  ;;  %v98_v2 = vld [vmem:[#allocation9 + $0x20] sm:$0xff]  ;;  %vm3159_vm0 = vmmov 0  }
  0x4c   :  { %223 = vmatprep.mubr.f32.mxu0 %v3157_v0  ;;  %v94_v3 = vld [vmem:[#allocation9] sm:$0xff]  ;;  %v2354_v4 = vpack.c.bf16 %v98_v2, %v95_v1  ;;  %v97_v5 = vld [vmem:[#allocation9 + $0x18] sm:$0xff]  ;;  %v104_v7 = vld [vmem:[#allocation9 + $0x50] sm:$0xff]  ;;  %s3161_s9 = smov [#allocation13]  }
  0x4d   :  { %v101_v6 = vld [vmem:[#allocation9 + $0x38] sm:$0xff]  ;;  %v2356_v8 = vpack.c.bf16 %v97_v5, %v94_v3  ;;  %v100_v10 = vld [vmem:[#allocation9 + $0x30] sm:$0xff]  ;;  %v103_v11 = vld [vmem:[#allocation9 + $0x48] sm:$0xff]  ;;  %s1839_s10 = sshll.u32 %s3161_s9, 4  ;;  %s1840_s10 = int_to_ptr.vmem [resolvable:$true] %s1839_s10 }
  0x4e   :  { %v2358_v9 = vpack.c.bf16 %v104_v7, %v101_v6  ;;  %v107_v12 = vld [vmem:[#allocation9 + $0x68] sm:$0xff]  ;;  %2355 = vmatprep.subr.bf16.mxu0 %v2354_v4  ;;  %v110_v13 = vld [vmem:[#allocation9 + $0x80] sm:$0xff]  ;;  %v2360_v14 = vpack.c.bf16 %v103_v11, %v100_v10  ;;  %v109_v17 = vld [vmem:[#allocation9 + $0x78] sm:$0xff] }
  0x4f   :  { %2357 = vmatpush1.bf16.msra.mxu0 %v2356_v8  ;;  %v2362_v15 = vpack.c.bf16 %v110_v13, %v107_v12  ;;  %v106_v16 = vld [vmem:[#allocation9 + $0x60] sm:$0xff]  ;;  %v113_v18 = vld [vmem:[#allocation9 + $0x98] sm:$0xff]  ;;  %v116_v19 = vld [vmem:[#allocation9 + $0xb0] sm:$0xff] }
  0x50   :  { %2359 = vmatprep.subr.bf16.mxu0 %v2358_v9  ;;  %v2364_v20 = vpack.c.bf16 %v109_v17, %v106_v16  ;;  %v112_v21 = vld [vmem:[#allocation9 + $0x90] sm:$0xff]  ;;  %v2366_v22 = vpack.c.bf16 %v116_v19, %v113_v18  ;;  %v115_v23 = vld [vmem:[#allocation9 + $0xa8] sm:$0xff]  ;;  %v122_v27 = vld [vmem:[#allocation9 + $0xe0] sm:$0xff] }
  0x51   :  { %v96_v24 = vld [vmem:[#allocation9 + $0x10] sm:$0xff]  ;;  %v99_v25 = vld [vmem:[#allocation9 + $0x28] sm:$0xff]  ;;  %v102_v29 = vld [vmem:[#allocation9 + $0x40] sm:$0xff]  ;;  %v2368_v31 = vpack.c.bf16 %v115_v23, %v112_v21 }
  0x52   :  { %v119_v26 = vld [vmem:[#allocation9 + $0xc8] sm:$0xff]  ;;  %v2386_v28 = vpack.c.bf16 %v99_v25, %v96_v24  ;;  %v105_v30 = vld [vmem:[#allocation9 + $0x58] sm:$0xff]  ;;  %v118_v32 = vld [vmem:[#allocation9 + $0xc0] sm:$0xff] }
  0x53   :  { %2361 = vmatpush1.bf16.msra.mxu0 %v2360_v14  ;;  %v2390_v33 = vpack.c.bf16 %v105_v30, %v102_v29  ;;  %v2370_v34 = vpack.c.bf16 %v122_v27, %v119_v26  ;;  %v121_v35 = vld [vmem:[#allocation9 + $0xd8] sm:$0xff]  ;;  %v108_v37 = vld [vmem:[#allocation9 + $0x70] sm:$0xff]  ;;  %v111_v40 = vld [vmem:[#allocation9 + $0x88] sm:$0xff] }
  0x54   :  { %2363 = vmatprep.subr.bf16.mxu0 %v2362_v15  ;;  %2387 = vmatprep.subr.bf16.mxu1 %v2386_v28  ;;  %v3261_v36 = vld [vmem:[#allocation4] sm:$0xff]  ;;  %v128_v39 = vld [vmem:[#allocation9 + $0x110] sm:$0xff]  ;;  %v2394_v41 = vpack.c.bf16 %v111_v40, %v108_v37  ;;  %v2372_v42 = vpack.c.bf16 %v121_v35, %v118_v32  ;;  %v114_v43 = vld [vmem:[#allocation9 + $0xa0] sm:$0xff]  ;;  %v3158_v40 = vmov 0.0|0.0  }
  0x55   :  { %2389 = vmatpush3.bf16.msra.mxu1 %v2386_v28  ;;  %v125_v38 = vld [vmem:[#allocation9 + $0xf8] sm:$0xff]  ;;  %2062 = vmatprep.mubr.f32.mxu1 %v3261_v36  ;;  %v124_v46 = vld [vmem:[#allocation9 + $0xf0] sm:$0xff]  ;;  %v127_v47 = vld [vmem:[#allocation9 + $0x108] sm:$0xff] }
  0x56   :  { %2391 = vmatprep.subr.bf16.mxu1 %v2390_v33  ;;  %v117_v44 = vld [vmem:[#allocation9 + $0xb8] sm:$0xff]  ;;  %v2374_v45 = vpack.c.bf16 %v128_v39, %v125_v38  ;;  %v131_v48 = vld [vmem:[#allocation9 + $0x128] sm:$0xff]  ;;  %v134_v49 = vld [vmem:[#allocation9 + $0x140] sm:$0xff]  ;;  %v2376_v53 = vpack.c.bf16 %v127_v47, %v124_v46 }
  0x57   :  { %2365 = vmatpush1.bf16.msra.mxu0 %v2364_v20  ;;  %v2398_v50 = vpack.c.bf16 %v117_v44, %v114_v43  ;;  %v120_v51 = vld [vmem:[#allocation9 + $0xd0] sm:$0xff]  ;;  %v123_v52 = vld [vmem:[#allocation9 + $0xe8] sm:$0xff]  ;;  %v2378_v54 = vpack.c.bf16 %v134_v49, %v131_v48  ;;  %v130_v55 = vld [vmem:[#allocation9 + $0x120] sm:$0xff] }
  0x58   :  { %2367 = vmatprep.subr.bf16.mxu0 %v2366_v22  ;;  %v133_v56 = vld [vmem:[#allocation9 + $0x138] sm:$0xff]  ;;  %v140_v58 = vld [vmem:[#allocation9 + $0x170] sm:$0xff]  ;;  %v2402_v59 = vpack.c.bf16 %v123_v52, %v120_v51  ;;  %v126_v60 = vld [vmem:[#allocation9 + $0x100] sm:$0xff] }
  0x59   :  { %2393 = vmatpush3.bf16.msra.mxu1 %v2390_v33  ;;  %v137_v57 = vld [vmem:[#allocation9 + $0x158] sm:$0xff]  ;;  %v2380_v62 = vpack.c.bf16 %v133_v56, %v130_v55  ;;  %v136_v1 = vld [vmem:[#allocation9 + $0x150] sm:$0xff]  ;;  %v139_v2 = vld [vmem:[#allocation9 + $0x168] sm:$0xff] }
  0x5a   :  { %2395 = vmatprep.subr.bf16.mxu1 %v2394_v41  ;;  %v129_v61 = vld [vmem:[#allocation9 + $0x118] sm:$0xff]  ;;  %v2382_v63 = vpack.c.bf16 %v140_v58, %v137_v57  ;;  %v402_v3 = vld [vmem:[#allocation10 + $0x8] sm:$0xff]  ;;  %v405_v4 = vld [vmem:[#allocation10 + $0x20] sm:$0xff]  ;;  %v2384_v8 = vpack.c.bf16 %v139_v2, %v136_v1 }
  0x5b   :  { %2369 = vmatpush1.bf16.msra.mxu0 %v2368_v31  ;;  %v2406_v5 = vpack.c.bf16 %v129_v61, %v126_v60  ;;  %v132_v6 = vld [vmem:[#allocation9 + $0x130] sm:$0xff]  ;;  %v135_v7 = vld [vmem:[#allocation9 + $0x148] sm:$0xff]  ;;  %v3264_v9 = vpack.c.bf16 %v405_v4, %v402_v3  ;;  %v401_v10 = vld [vmem:[#allocation10] sm:$0xff] }
  0x5c   :  { %2371 = vmatprep.subr.bf16.mxu0 %v2370_v34  ;;  %v404_v11 = vld [vmem:[#allocation10 + $0x18] sm:$0xff]  ;;  %v411_v13 = vld [vmem:[#allocation10 + $0x50] sm:$0xff]  ;;  %v2410_v14 = vpack.c.bf16 %v135_v7, %v132_v6  ;;  %v138_v15 = vld [vmem:[#allocation9 + $0x160] sm:$0xff] }
  0x5d   :  { %2397 = vmatpush3.bf16.msra.mxu1 %v2394_v41  ;;  %v408_v12 = vld [vmem:[#allocation10 + $0x38] sm:$0xff]  ;;  %v3266_v17 = vpack.c.bf16 %v404_v11, %v401_v10  ;;  %v407_v19 = vld [vmem:[#allocation10 + $0x30] sm:$0xff]  ;;  %v410_v20 = vld [vmem:[#allocation10 + $0x48] sm:$0xff] }
  0x5e   :  { %2399 = vmatprep.subr.bf16.mxu1 %v2398_v50  ;;  %v141_v16 = vld [vmem:[#allocation9 + $0x178] sm:$0xff]  ;;  %v3269_v18 = vpack.c.bf16 %v411_v13, %v408_v12  ;;  %v414_v21 = vld [vmem:[#allocation10 + $0x68] sm:$0xff]  ;;  %v417_v22 = vld [vmem:[#allocation10 + $0x80] sm:$0xff]  ;;  %v3274_v25 = vpack.c.bf16 %v410_v20, %v407_v19 }
  0x5f   :  { %2373 = vmatpush1.bf16.msra.mxu0 %v2372_v42  ;;  %v2414_v23 = vpack.c.bf16 %v141_v16, %v138_v15  ;;  %v87_v24 = vld [vmem:[#allocation4 + $0x8] sm:$0xff]  ;;  %v3277_v26 = vpack.c.bf16 %v417_v22, %v414_v21  ;;  %v416_v28 = vld [vmem:[#allocation10 + $0x78] sm:$0xff]  ;;  %v423_v30 = vld [vmem:[#allocation10 + $0xb0] sm:$0xff] }
  0x60   :  { %2375 = vmatprep.subr.bf16.mxu0 %v2374_v45  ;;  %v413_v27 = vld [vmem:[#allocation10 + $0x60] sm:$0xff]  ;;  %v420_v29 = vld [vmem:[#allocation10 + $0x98] sm:$0xff]  ;;  %v403_v31 = vld [vmem:[#allocation10 + $0x10] sm:$0xff] }
  0x61   :  { %2401 = vmatpush3.bf16.msra.mxu1 %v2398_v50  ;;  %v406_v32 = vld [vmem:[#allocation10 + $0x28] sm:$0xff]  ;;  %v3281_v34 = vpack.c.bf16 %v416_v28, %v413_v27  ;;  %v3284_v35 = vpack.c.bf16 %v423_v30, %v420_v29  ;;  %v429_v39 = vld [vmem:[#allocation10 + $0xe0] sm:$0xff]  ;;  %v412_v43 = vld [vmem:[#allocation10 + $0x58] sm:$0xff] }
  0x62   :  { %2403 = vmatprep.subr.bf16.mxu1 %v2402_v59  ;;  %v88_v33 = vld [vmem:[#allocation4 + $0x10] sm:$0xff]  ;;  %v3287_v41 = vpack.c.bf16 %v406_v32, %v403_v31  ;;  %v409_v42 = vld [vmem:[#allocation10 + $0x40] sm:$0xff]  ;;  %v89_v44 = vld [vmem:[#allocation4 + $0x18] sm:$0xff] }
  0x63   :  { %2377 = vmatpush1.bf16.msra.mxu0 %v2376_v53  ;;  %v422_v37 = vld [vmem:[#allocation10 + $0xa8] sm:$0xff]  ;;  %v425_v47 = vld [vmem:[#allocation10 + $0xc0] sm:$0xff]  ;;  %v428_v48 = vld [vmem:[#allocation10 + $0xd8] sm:$0xff]  ;;  %v3297_v51 = vpack.c.bf16 %v412_v43, %v409_v42 }
  0x64   :  { %2379 = vmatprep.subr.bf16.mxu0 %v2378_v54  ;;  %v426_v38 = vld [vmem:[#allocation10 + $0xc8] sm:$0xff]  ;;  %v432_v49 = vld [vmem:[#allocation10 + $0xf8] sm:$0xff]  ;;  %v435_v50 = vld [vmem:[#allocation10 + $0x110] sm:$0xff]  ;;  %v3302_v55 = vpack.c.bf16 %v428_v48, %v425_v47 }
  0x65   :  { %2405 = vmatpush3.bf16.msra.mxu1 %v2402_v59  ;;  %v3294_v46 = vpack.c.bf16 %v429_v39, %v426_v38  ;;  %v415_v52 = vld [vmem:[#allocation10 + $0x70] sm:$0xff]  ;;  %v418_v53 = vld [vmem:[#allocation10 + $0x88] sm:$0xff]  ;;  %v90_v54 = vld [vmem:[#allocation4 + $0x20] sm:$0xff]  ;;  %v3305_v56 = vpack.c.bf16 %v435_v50, %v432_v49 }
  0x66   :  { %2407 = vmatprep.subr.bf16.mxu1 %v2406_v5  ;;  %v431_v57 = vld [vmem:[#allocation10 + $0xf0] sm:$0xff]  ;;  %v434_v58 = vld [vmem:[#allocation10 + $0x108] sm:$0xff]  ;;  %v441_v60 = vld [vmem:[#allocation10 + $0x140] sm:$0xff]  ;;  %v3308_v61 = vpack.c.bf16 %v418_v53, %v415_v52 }
  0x67   :  { %2381 = vmatpush1.bf16.msra.mxu0 %v2380_v62  ;;  %v438_v59 = vld [vmem:[#allocation10 + $0x128] sm:$0xff]  ;;  %v421_v62 = vld [vmem:[#allocation10 + $0xa0] sm:$0xff]  ;;  %v3313_v2 = vpack.c.bf16 %v434_v58, %v431_v57  ;;  %v440_v6 = vld [vmem:[#allocation10 + $0x138] sm:$0xff] }
  0x68   :  { %2383 = vmatprep.subr.bf16.mxu0 %v2382_v63  ;;  %v424_v63 = vld [vmem:[#allocation10 + $0xb8] sm:$0xff]  ;;  %v91_v1 = vld [vmem:[#allocation4 + $0x28] sm:$0xff]  ;;  %v92_v3 = vld [vmem:[#allocation4 + $0x30] sm:$0xff]  ;;  %v3316_v4 = vpack.c.bf16 %v441_v60, %v438_v59 }
  0x69   :  { %2409 = vmatpush3.bf16.msra.mxu1 %v2406_v5  ;;  %v437_v5 = vld [vmem:[#allocation10 + $0x120] sm:$0xff]  ;;  %v444_v7 = vld [vmem:[#allocation10 + $0x158] sm:$0xff]  ;;  %v3319_v10 = vpack.c.bf16 %v424_v63, %v421_v62  ;;  %v427_v11 = vld [vmem:[#allocation10 + $0xd0] sm:$0xff] }
  0x6a   :  { %2411 = vmatprep.subr.bf16.mxu1 %v2410_v14  ;;  %v430_v12 = vld [vmem:[#allocation10 + $0xe8] sm:$0xff]  ;;  %v3324_v13 = vpack.c.bf16 %v440_v6, %v437_v5  ;;  %v443_v16 = vld [vmem:[#allocation10 + $0x150] sm:$0xff]  ;;  %v433_v21 = vld [vmem:[#allocation10 + $0x100] sm:$0xff] }
  0x6b   :  { %2385 = vmatpush1.bf16.msra.mxu0 %v2384_v8  ;;  %v447_v8 = vld [vmem:[#allocation10 + $0x170] sm:$0xff]  ;;  %v446_v19 = vld [vmem:[#allocation10 + $0x168] sm:$0xff]  ;;  %v3330_v20 = vpack.c.bf16 %v430_v12, %v427_v11  ;;  %v436_v22 = vld [vmem:[#allocation10 + $0x118] sm:$0xff] }
  0x6c   :  { %2419 = vmatprep.subr.bf16.mxu0 %v3264_v9  ;;  %v3327_v15 = vpack.c.bf16 %v447_v8, %v444_v7  ;;  %v439_v27 = vld [vmem:[#allocation10 + $0x130] sm:$0xff]  ;;  %v442_v28 = vld [vmem:[#allocation10 + $0x148] sm:$0xff]  ;;  %v3346_v29 = vld [vmem:[#allocation7] sm:$0xff] }
  0x6d   :  { %2413 = vmatpush3.bf16.msra.mxu1 %v2410_v14  ;;  %v93_v14 = vld [vmem:[#allocation4 + $0x38] sm:$0xff]  ;;  %v3350_v30 = vpack.c.bf16 %v442_v28, %v439_v27  ;;  %v445_v31 = vld [vmem:[#allocation10 + $0x160] sm:$0xff]  ;;  %v448_v32 = vld [vmem:[#allocation10 + $0x178] sm:$0xff] }
  0x6e   :  { %224 = vmatmul.mubr.f32.vlgmr.msra.gmra.mrb[0].mxu0 %v3261_v36  ;;  %2415 = vmatprep.subr.bf16.mxu1 %v2414_v23  ;;  %v419_v36 = vld [vmem:[#allocation10 + $0x90] sm:$0xff]  ;;  %v142_v39 = vld [vmem:[%s3722_s3] sm:$0x7] }
  0x6f   :  { %2421 = vmatpush1.bf16.msra.mxu0 %v3266_v17  ;;  %229 = vmatprep.mubr.f32.mxu0 %v3157_v0  ;;  %v3291_v45 = vpack.c.bf16 %v422_v37, %v419_v36  ;;  %v144_v36 = vlaneseq  ;;  %v449_v60 = vld [vmem:[%s3724_s5] sm:$0x7]  ;;  %s3160_s5 = smov [#allocation12]  }
  0x70   :  { %2423 = vmatprep.subr.bf16.mxu0 %v3269_v18  ;;  %s1826_s8 = sshll.u32 %s3160_s5, 4  ;;  %s1827_s8 = int_to_ptr.vmem [resolvable:$true] %s1826_s8 }
  0x71   :  { %2417 = vmatpush3.bf16.msra.mxu1 %v2414_v23  ;;  %v3337_v23 = vpack.c.bf16 %v446_v19, %v443_v16  ;;  %v145_v37 = vshrl.u32 %v144_v36, 7  ;;  %s3095_s11 = scalar_lea.vmem %s1827_s8, 1024  ;;  %p3100_p5 = scmp.lt.s32.totalorder %s1827_s8, %s1827_s8 }
  0x72   :  { %230 = vmatmul.mubr.f32.gmra.mrb[2].mxu0 %v87_v24  ;;  %2450 = vmatprep.subr.bf16.mxu1 %v3158_v40  ;;  %p3096_p4 = scmp.ne.s32.totalorder %s1827_s8, %s3095_s11  ;;  %p3101_p6 = scmp.lt.s32.totalorder %s3095_s11, %s3095_s11 }
  0x73   :  { %2425 = vmatpush1.bf16.msra.mxu0 %v3274_v25  ;;  %235 = vmatprep.mubr.f32.mxu0 %v3157_v0  ;;  %v154_v38 = vsub.s32 2, %v145_v37  ;;  %v146_v59 = vsub.s32 0, %v145_v37  ;;  %v150_v8 = vsub.s32 1, %v145_v37 }
  0x74   :  { %2427 = vmatprep.subr.bf16.mxu0 %v3277_v26  ;;  %2063 = vmatmul.mubr.f32.vlgmr.msra.gmra.mrb[0].mxu1 %v87_v24  ;;  %v3341_v24 = vpack.c.bf16 %v436_v22, %v433_v21  ;;  %p3102_p7 = por %p3101_p6, %p3100_p5 }
  0x75   :  { %2452 = vmatpush3.bf16.msra.mxu1 %v3287_v41  ;;  %2065 = vmatprep.mubr.f32.mxu1 %v88_v33  ;;  %v155_v42 = vrot.slane %v142_v39, %v154_v38  ;;  %v147_v5 = vrot.slane %v142_v39, %v146_v59  ;;  %v454_v6 = vrot.slane %v449_v60, %v146_v59 }
  0x76   :  { %236 = vmatmul.mubr.f32.gmra.mrb[4].mxu0 %v88_v33  ;;  %2453 = vmatprep.subr.bf16.mxu1 %v3158_v40  ;;  %v3358_v33 = vpack.c.bf16 %v448_v32, %v445_v31  ;;  %v458_v16 = vrot.slane %v449_v60, %v150_v8  ;;  %v3422_v37 = vrot.slane %v449_v60, %v154_v38  ;;  %p3103_p8 = pnand %p3102_p7, %p3096_p4 }
  0x77   :  { %2429 = vmatpush1.bf16.msra.mxu0 %v3281_v34  ;;  %241 = vmatprep.mubr.f32.mxu0 %v3157_v0  ;;  %v3416_v7 = vadd.f32 %v454_v6, %v147_v5 }
  0x78   :  { %2431 = vmatprep.subr.bf16.mxu0 %v3284_v35  ;;  %2066 = vmatmul.mubr.f32.gmra.mrb[2].mxu1 %v89_v44 }
  0x79   :  { %2455 = vmatpush3.bf16.msra.mxu1 %v3297_v51  ;;  %2068 = vmatprep.mubr.f32.mxu1 %v90_v54 }
  0x7a   :  { %242 = vmatmul.mubr.f32.gmra.mrb[6].mxu0 %v89_v44  ;;  %2456 = vmatprep.subr.bf16.mxu1 %v3158_v40 }
  0x7b   :  { %2433 = vmatpush1.bf16.msra.mxu0 %v3291_v45  ;;  %247 = vmatprep.mubr.f32.mxu0 %v3157_v0 }
  0x7c   :  { %2435 = vmatprep.subr.bf16.mxu0 %v3294_v46  ;;  %2069 = vmatmul.mubr.f32.gmra.mrb[4].mxu1 %v91_v1 }
  0x7d   :  { %2458 = vmatpush3.bf16.msra.mxu1 %v3308_v61  ;;  %2071 = vmatprep.mubr.f32.mxu1 %v92_v3 }
  0x7e   :  { %248 = vmatmul.mubr.f32.gmra.mrb[8].mxu0 %v90_v54  ;;  %2459 = vmatprep.subr.bf16.mxu1 %v3158_v40 }
  0x7f   :  { %2437 = vmatpush1.bf16.msra.mxu0 %v3302_v55  ;;  %253 = vmatprep.mubr.f32.mxu0 %v3157_v0 }
  0x80   :  { %2439 = vmatprep.subr.bf16.mxu0 %v3305_v56  ;;  %2072 = vmatmul.mubr.f32.gmra.mrb[6].mxu1 %v93_v14 }
  0x81   :  { %2461 = vmatpush3.bf16.msra.mxu1 %v3319_v10  ;;  %2106 = vmatprep.mubr.msk.f32.mxu1 %vm3159_vm0, %v3157_v0 }
  0x82   :  { %254 = vmatmul.mubr.f32.gmra.mrb[10].mxu0 %v91_v1  ;;  %2462 = vmatprep.subr.bf16.mxu1 %v3158_v40 }
  0x83   :  { %2441 = vmatpush1.bf16.msra.mxu0 %v3313_v2  ;;  %259 = vmatprep.mubr.f32.mxu0 %v3157_v0 }
  0x84   :  { %2443 = vmatprep.subr.bf16.mxu0 %v3316_v4 }
  0x85   :  { %2464 = vmatpush3.bf16.msra.mxu1 %v3330_v20 }
  0x86   :  { %260 = vmatmul.mubr.f32.gmra.mrb[12].mxu0 %v92_v3  ;;  %2465 = vmatprep.subr.bf16.mxu1 %v3158_v40 }
  0x87   :  { %2445 = vmatpush1.bf16.msra.mxu0 %v3324_v13  ;;  %265 = vmatprep.mubr.f32.mxu0 %v3157_v0 }
  0x88   :  { %2447 = vmatprep.subr.bf16.mxu0 %v3327_v15 }
  0x89   :  { %2467 = vmatpush3.bf16.msra.mxu1 %v3341_v24 }
  0x8a   :  { %266 = vmatmul.mubr.f32.gmra.mrb[14].mxu0 %v93_v14  ;;  %2468 = vmatprep.subr.bf16.mxu1 %v3158_v40  ;;  %v151_v14 = vrot.slane %v142_v39, %v150_v8 }
  0x8b   :  { %2449 = vmatpush1.bf16.msra.mxu0 %v3337_v23  ;;  %531 = vmatprep.mubr.f32.mxu0 %v3157_v0 }
  0x8c   :  { %2475 = vmatprep.subr.bf16.mxu0 %v3264_v9  ;;  %v3419_v22 = vadd.f32 %v458_v16, %v151_v14 }
  0x8d   :  { %2470 = vmatpush3.bf16.msra.mxu1 %v3350_v30 }
  0x8e   :  { %532 = vmatmul.mubr.f32.vlgmr.msra.gmra.mrb[0].mxu0 %v3346_v29  ;;  %2471 = vmatprep.subr.bf16.mxu1 %v3158_v40 }
  0x8f   :  { %2477 = vmatpush1.bf16.msra.mxu0 %v3266_v17  ;;  %698 = vmatprep.mubr.f32.mxu0 %v3157_v0 }
  0x90   :  { %2479 = vmatprep.subr.bf16.mxu0 %v3269_v18 }
  0x91   :  { %2473 = vmatpush3.bf16.msra.mxu1 %v3358_v33 }
  0x92   :  { %2506 = vmatprep.subr.bf16.mxu1 %v3158_v40 }
  0x93   :  { %2481 = vmatpush1.bf16.msra.mxu0 %v3274_v25 }
  0x94   :  { %2483 = vmatprep.subr.bf16.mxu0 %v3277_v26  ;;  %2107 = vmatmul.mubr.f32.vlgmr.msra.gmra.mrb[8].mxu1 %v3346_v29 }
  0x95   :  { %2508 = vmatpush3.bf16.msra.mxu1 %v3287_v41  ;;  %2141 = vmatprep.mubr.msk.f32.mxu1 %vm3159_vm0, %v3157_v0 }
  0x96   :  { %2509 = vmatprep.subr.bf16.mxu1 %v3158_v40 }
  0x97   :  { %2485 = vmatpush1.bf16.msra.mxu0 %v3281_v34 }
  0x98   :  { %2487 = vmatprep.subr.bf16.mxu0 %v3284_v35 }
  0x99   :  { %2511 = vmatpush3.bf16.msra.mxu1 %v3297_v51 }
  0x9a   :  { %2512 = vmatprep.subr.bf16.mxu1 %v3158_v40 }
  0x9b   :  { %2489 = vmatpush1.bf16.msra.mxu0 %v3291_v45 }
  0x9c   :  { %2491 = vmatprep.subr.bf16.mxu0 %v3294_v46 }
  0x9d   :  { %2514 = vmatpush3.bf16.msra.mxu1 %v3308_v61 }
  0x9e   :  { %2515 = vmatprep.subr.bf16.mxu1 %v3158_v40 }
  0x9f   :  { %2493 = vmatpush1.bf16.msra.mxu0 %v3302_v55 }
  0xa0   :  { %2495 = vmatprep.subr.bf16.mxu0 %v3305_v56 }
  0xa1   :  { %2517 = vmatpush3.bf16.msra.mxu1 %v3319_v10 }
  0xa2   :  { %2518 = vmatprep.subr.bf16.mxu1 %v3158_v40 }
  0xa3   :  { %2497 = vmatpush1.bf16.msra.mxu0 %v3313_v2 }
  0xa4   :  { %2499 = vmatprep.subr.bf16.mxu0 %v3316_v4 }
  0xa5   :  { %2520 = vmatpush3.bf16.msra.mxu1 %v3330_v20 }
  0xa6   :  { %2521 = vmatprep.subr.bf16.mxu1 %v3158_v40 }
  0xa7   :  { %2501 = vmatpush1.bf16.msra.mxu0 %v3324_v13 }
  0xa8   :  { %2503 = vmatprep.subr.bf16.mxu0 %v3327_v15 }
  0xa9   :  { %2523 = vmatpush3.bf16.msra.mxu1 %v3341_v24 }
  0xaa   :  { %2524 = vmatprep.subr.bf16.mxu1 %v3158_v40 }
  0xab   :  { %2505 = vmatpush1.bf16.msra.mxu0 %v3337_v23 }
  0xac   :  { %2531 = vmatprep.subr.bf16.mxu0 %v3264_v9 }
  0xad   :  { %2526 = vmatpush3.bf16.msra.mxu1 %v3350_v30 }
  0xae   :  { %2527 = vmatprep.subr.bf16.mxu1 %v3158_v40 }
  0xb1   :  { %2529 = vmatpush3.bf16.msra.mxu1 %v3358_v33 }
  0xb2   :  { %2562 = vmatprep.subr.bf16.mxu1 %v3158_v40 }
 0x147   :  { %v2064_v43 = vpop.f32.mrb[0].mxu1 }
 0x148   :  { %v3399_v44 = vadd.f32 %v2064_v43, %v155_v42  ;;  %v338_v47 = vpop.f32.mrb[1].mxu1 }
 0x14b   :  { %v2067_v48 = vpop.f32.mrb[2].mxu1 }
 0x14c   :  { %v3401_v49 = vadd.f32 %v2067_v48, %v155_v42  ;;  %v348_v50 = vpop.f32.mrb[3].mxu1 }
 0x14d   :  { %v3403_v52 = vadd.f32 %v348_v50, %v155_v42 }
 0x14f   :  { %v2070_v53 = vpop.f32.mrb[4].mxu1 }
 0x150   :  { %v3405_v54 = vadd.f32 %v2070_v53, %v155_v42  ;;  %v358_v57 = vpop.f32.mrb[5].mxu1  ;;  %v339_v53 = vadd.f32 %v338_v47, %v155_v42 }
 0x151   :  { %v3407_v58 = vadd.f32 %v358_v57, %v155_v42 }
 0x153   :  { %v2073_v62 = vpop.f32.mrb[6].mxu1 }
 0x154   :  { %v3412_v63 = vadd.f32 %v2073_v62, %v155_v42  ;;  %v368_v1 = vpop.f32.mrb[7].mxu1 }
 0x155   :  { %v3414_v3 = vadd.f32 %v368_v1, %v155_v42 }
 0x161   :  { %v533_v11 = vpop.f32.mrb[0].mxu0 }
 0x162   :  { %v2867_v12 = vadd.f32 %v3416_v7, %v533_v11  ;;  %v535_v19 = vpop.f32.mrb[1].mxu0 }
 0x163   :  { %v2869_v27 = vadd.f32 %v3419_v22, %v535_v19 }
 0x164   :  { %v1854_v21 = vmul.f32 -1.442695, %v2867_v12 }
 0x165   :  { %v1855_v32 = vmul.f32 -1.442695, %v2869_v27 }
 0x166   :  { %2927 = vpow2.f32 %v1854_v21 }
 0x167   :  { %v604_v28 = vpop.f32.mrb[8].mxu1  ;;  %2929 = vpow2.f32 %v1855_v32 }
 0x168   :  { %v2108_v31 = vpop.f32.mrb[9].mxu1  ;;  %v605_v48 = vadd.f32 %v604_v28, %v3422_v37 }
 0x170   :  { %v2928_v36 = vpop.eup %2927 }
 0x171   :  { %v619_v43 = vadd.f32 1.0, %v2928_v36  ;;  %v2930_v39 = vpop.eup %2929 }
 0x172   :  { %v620_v59 = vadd.f32 1.0, %v2930_v39 }
 0x173   :  { %2931 = vrcp.f32 %v619_v43 }
 0x17d   :  { %v2932_v50 = vpop.eup %2931 }
 0x17e   :  { %v625_v57 = vmul.f32 %v2932_v50, %v605_v48 }
 0x180   :  { %v626_v62 = vadd.f32 %v625_v57, %v339_v53 }
 0x182   :  { %2933 = vtanh.f32 %v626_v62 }
 0x183   :  { %2935 = vrcp.f32 %v620_v59 }
 0x18c   :  { %v2934_v1 = vpop.eup %2933 }
 0x18d   :  { %v628_v5 = vsub.f32 %v3346_v29, %v2934_v1  ;;  %v2936_v6 = vpop.eup %2935 }
 0x18f   :  { %v629_v8 = vmul.f32 %v2936_v6, %v628_v5 }
 0x191   :  { %v3426_v11 = vadd.f32 %v2934_v1, %v629_v8 }
 0x193   :  { %632 = vst [vmem:[#allocation12] sm:$0xff] %v3426_v11  ;;  %699 = vmatmul.mubr.f32.vlgmr.msra.gmra.mrb[2].mxu0 %v3426_v11  ;;  %2142 = vmatmul.mubr.f32.vlgmr.msra.gmra.mrb[10].mxu1 %v3426_v11 }
 0x194   :  { %2533 = vmatpush1.bf16.msra.mxu0 %v3266_v17  ;;  %2564 = vmatpush3.bf16.msra.mxu1 %v3287_v41 }
 0x195   :  { %2535 = vmatprep.subr.bf16.mxu0 %v3269_v18  ;;  %2565 = vmatprep.subr.bf16.mxu1 %v3158_v40 }
 0x196   :  { %867 = vmatprep.mubr.f32.mxu0 %v3157_v0  ;;  %2176 = vmatprep.mubr.msk.f32.mxu1 %vm3159_vm0, %v3157_v0 }
 0x198   :  { %2537 = vmatpush1.bf16.msra.mxu0 %v3274_v25  ;;  %2567 = vmatpush3.bf16.msra.mxu1 %v3297_v51 }
 0x199   :  { %2539 = vmatprep.subr.bf16.mxu0 %v3277_v26  ;;  %2568 = vmatprep.subr.bf16.mxu1 %v3158_v40 }
 0x19c   :  { %2541 = vmatpush1.bf16.msra.mxu0 %v3281_v34  ;;  %2570 = vmatpush3.bf16.msra.mxu1 %v3308_v61 }
 0x19d   :  { %2543 = vmatprep.subr.bf16.mxu0 %v3284_v35  ;;  %2571 = vmatprep.subr.bf16.mxu1 %v3158_v40 }
 0x1a0   :  { %2545 = vmatpush1.bf16.msra.mxu0 %v3291_v45  ;;  %2573 = vmatpush3.bf16.msra.mxu1 %v3319_v10 }
 0x1a1   :  { %2547 = vmatprep.subr.bf16.mxu0 %v3294_v46  ;;  %2574 = vmatprep.subr.bf16.mxu1 %v3158_v40 }
 0x1a4   :  { %2549 = vmatpush1.bf16.msra.mxu0 %v3302_v55  ;;  %2576 = vmatpush3.bf16.msra.mxu1 %v3330_v20 }
 0x1a5   :  { %2551 = vmatprep.subr.bf16.mxu0 %v3305_v56  ;;  %2577 = vmatprep.subr.bf16.mxu1 %v3158_v40 }
 0x1a8   :  { %2553 = vmatpush1.bf16.msra.mxu0 %v3313_v2  ;;  %2579 = vmatpush3.bf16.msra.mxu1 %v3341_v24 }
 0x1a9   :  { %2555 = vmatprep.subr.bf16.mxu0 %v3316_v4  ;;  %2580 = vmatprep.subr.bf16.mxu1 %v3158_v40 }
 0x1ac   :  { %2557 = vmatpush1.bf16.msra.mxu0 %v3324_v13  ;;  %2582 = vmatpush3.bf16.msra.mxu1 %v3350_v30 }
 0x1ad   :  { %2559 = vmatprep.subr.bf16.mxu0 %v3327_v15  ;;  %2583 = vmatprep.subr.bf16.mxu1 %v3158_v40 }
 0x1b0   :  { %2561 = vmatpush1.bf16.msra.mxu0 %v3337_v23  ;;  %2585 = vmatpush3.bf16.msra.mxu1 %v3358_v33 }
 0x1b1   :  { %2587 = vmatprep.subr.bf16.mxu0 %v3264_v9  ;;  %2618 = vmatprep.subr.bf16.mxu1 %v3158_v40 }
 0x266   :  { %v700_v29 = vpop.f32.mrb[2].mxu0  ;;  %v771_v38 = vpop.f32.mrb[10].mxu1 }
 0x267   :  { %v2871_v42 = vadd.f32 %v3416_v7, %v700_v29  ;;  %v702_v47 = vpop.f32.mrb[3].mxu0  ;;  %v2143_v60 = vpop.f32.mrb[11].mxu1  ;;  %v772_v28 = vadd.f32 %v771_v38, %v3422_v37 }
 0x268   :  { %v2873_v14 = vadd.f32 %v3419_v22, %v702_v47 }
 0x269   :  { %v1856_v12 = vmul.f32 -1.442695, %v2871_v42 }
 0x26a   :  { %v1857_v16 = vmul.f32 -1.442695, %v2873_v14 }
 0x26b   :  { %2937 = vpow2.f32 %v1856_v12 }
 0x26c   :  { %2939 = vpow2.f32 %v1857_v16 }
 0x275   :  { %v2938_v19 = vpop.eup %2937 }
 0x276   :  { %v787_v21 = vadd.f32 1.0, %v2938_v19  ;;  %v2940_v27 = vpop.eup %2939 }
 0x277   :  { %v788_v43 = vadd.f32 1.0, %v2940_v27 }
 0x278   :  { %2941 = vrcp.f32 %v787_v21 }
 0x282   :  { %v2942_v31 = vpop.eup %2941 }
 0x283   :  { %v793_v32 = vmul.f32 %v2942_v31, %v772_v28 }
 0x285   :  { %v794_v36 = vadd.f32 %v793_v32, %v3399_v44 }
 0x287   :  { %2943 = vtanh.f32 %v794_v36 }
 0x288   :  { %2945 = vrcp.f32 %v788_v43 }
 0x291   :  { %v2944_v48 = vpop.eup %2943 }
 0x292   :  { %v796_v39 = vsub.f32 %v3426_v11, %v2944_v48  ;;  %v2946_v50 = vpop.eup %2945 }
 0x294   :  { %v797_v53 = vmul.f32 %v2946_v50, %v796_v39 }
 0x296   :  { %v3471_v57 = vadd.f32 %v2944_v48, %v797_v53 }
 0x298   :  { %801 = vst [vmem:[#allocation12 + $0x8] sm:$0xff] %v3471_v57  ;;  %868 = vmatmul.mubr.f32.vlgmr.msra.gmra.mrb[4].mxu0 %v3471_v57  ;;  %2177 = vmatmul.mubr.f32.vlgmr.msra.gmra.mrb[12].mxu1 %v3471_v57 }
 0x299   :  { %2589 = vmatpush1.bf16.msra.mxu0 %v3266_v17  ;;  %2620 = vmatpush3.bf16.msra.mxu1 %v3287_v41 }
 0x29a   :  { %2591 = vmatprep.subr.bf16.mxu0 %v3269_v18  ;;  %2621 = vmatprep.subr.bf16.mxu1 %v3158_v40 }
 0x29b   :  { %1036 = vmatprep.mubr.f32.mxu0 %v3157_v0  ;;  %2211 = vmatprep.mubr.msk.f32.mxu1 %vm3159_vm0, %v3157_v0 }
 0x29d   :  { %2593 = vmatpush1.bf16.msra.mxu0 %v3274_v25  ;;  %2623 = vmatpush3.bf16.msra.mxu1 %v3297_v51 }
 0x29e   :  { %2595 = vmatprep.subr.bf16.mxu0 %v3277_v26  ;;  %2624 = vmatprep.subr.bf16.mxu1 %v3158_v40 }
 0x2a1   :  { %2597 = vmatpush1.bf16.msra.mxu0 %v3281_v34  ;;  %2626 = vmatpush3.bf16.msra.mxu1 %v3308_v61 }
 0x2a2   :  { %2599 = vmatprep.subr.bf16.mxu0 %v3284_v35  ;;  %2627 = vmatprep.subr.bf16.mxu1 %v3158_v40 }
 0x2a5   :  { %2601 = vmatpush1.bf16.msra.mxu0 %v3291_v45  ;;  %2629 = vmatpush3.bf16.msra.mxu1 %v3319_v10 }
 0x2a6   :  { %2603 = vmatprep.subr.bf16.mxu0 %v3294_v46  ;;  %2630 = vmatprep.subr.bf16.mxu1 %v3158_v40 }
 0x2a9   :  { %2605 = vmatpush1.bf16.msra.mxu0 %v3302_v55  ;;  %2632 = vmatpush3.bf16.msra.mxu1 %v3330_v20 }
 0x2aa   :  { %2607 = vmatprep.subr.bf16.mxu0 %v3305_v56  ;;  %2633 = vmatprep.subr.bf16.mxu1 %v3158_v40 }
 0x2ad   :  { %2609 = vmatpush1.bf16.msra.mxu0 %v3313_v2  ;;  %2635 = vmatpush3.bf16.msra.mxu1 %v3341_v24 }
 0x2ae   :  { %2611 = vmatprep.subr.bf16.mxu0 %v3316_v4  ;;  %2636 = vmatprep.subr.bf16.mxu1 %v3158_v40 }
 0x2b1   :  { %2613 = vmatpush1.bf16.msra.mxu0 %v3324_v13  ;;  %2638 = vmatpush3.bf16.msra.mxu1 %v3350_v30 }
 0x2b2   :  { %2615 = vmatprep.subr.bf16.mxu0 %v3327_v15  ;;  %2639 = vmatprep.subr.bf16.mxu1 %v3158_v40 }
 0x2b5   :  { %2617 = vmatpush1.bf16.msra.mxu0 %v3337_v23  ;;  %2641 = vmatpush3.bf16.msra.mxu1 %v3358_v33 }
 0x2b6   :  { %2643 = vmatprep.subr.bf16.mxu0 %v3264_v9  ;;  %2674 = vmatprep.subr.bf16.mxu1 %v3158_v40 }
 0x36b   :  { %v869_v44 = vpop.f32.mrb[4].mxu0  ;;  %v940_v59 = vpop.f32.mrb[12].mxu1 }
 0x36c   :  { %v2875_v62 = vadd.f32 %v3416_v7, %v869_v44  ;;  %v871_v1 = vpop.f32.mrb[5].mxu0  ;;  %v2178_v5 = vpop.f32.mrb[13].mxu1  ;;  %v941_v47 = vadd.f32 %v940_v59, %v3422_v37 }
 0x36d   :  { %v2877_v8 = vadd.f32 %v3419_v22, %v871_v1 }
 0x36e   :  { %v1858_v6 = vmul.f32 -1.442695, %v2875_v62 }
 0x36f   :  { %v1859_v11 = vmul.f32 -1.442695, %v2877_v8 }
 0x370   :  { %2947 = vpow2.f32 %v1858_v6 }
 0x371   :  { %2949 = vpow2.f32 %v1859_v11 }
 0x37a   :  { %v2948_v29 = vpop.eup %2947 }
 0x37b   :  { %v956_v38 = vadd.f32 1.0, %v2948_v29  ;;  %v2950_v42 = vpop.eup %2949 }
 0x37c   :  { %v957_v16 = vadd.f32 1.0, %v2950_v42 }
 0x37d   :  { %2951 = vrcp.f32 %v956_v38 }
 0x387   :  { %v2952_v60 = vpop.eup %2951 }
 0x388   :  { %v962_v12 = vmul.f32 %v2952_v60, %v941_v47 }
 0x38a   :  { %v963_v14 = vadd.f32 %v962_v12, %v3403_v52 }
 0x38c   :  { %2953 = vtanh.f32 %v963_v14 }
 0x38d   :  { %2955 = vrcp.f32 %v957_v16 }
 0x396   :  { %v2954_v19 = vpop.eup %2953 }
 0x397   :  { %v965_v21 = vsub.f32 %v3471_v57, %v2954_v19  ;;  %v2956_v27 = vpop.eup %2955 }
 0x399   :  { %v966_v28 = vmul.f32 %v2956_v27, %v965_v21 }
 0x39b   :  { %v3516_v31 = vadd.f32 %v2954_v19, %v966_v28 }
 0x39d   :  { %970 = vst [vmem:[#allocation12 + $0x10] sm:$0xff] %v3516_v31  ;;  %1037 = vmatmul.mubr.f32.vlgmr.msra.gmra.mrb[6].mxu0 %v3516_v31  ;;  %2212 = vmatmul.mubr.f32.vlgmr.msra.gmra.mrb[14].mxu1 %v3516_v31 }
 0x39e   :  { %2645 = vmatpush1.bf16.msra.mxu0 %v3266_v17  ;;  %2676 = vmatpush3.bf16.msra.mxu1 %v3287_v41 }
 0x39f   :  { %2647 = vmatprep.subr.bf16.mxu0 %v3269_v18  ;;  %2677 = vmatprep.subr.bf16.mxu1 %v3158_v40 }
 0x3a0   :  { %1205 = vmatprep.mubr.f32.mxu0 %v3157_v0  ;;  %2246 = vmatprep.mubr.msk.f32.mxu1 %vm3159_vm0, %v3157_v0 }
 0x3a2   :  { %2649 = vmatpush1.bf16.msra.mxu0 %v3274_v25  ;;  %2679 = vmatpush3.bf16.msra.mxu1 %v3297_v51 }
 0x3a3   :  { %2651 = vmatprep.subr.bf16.mxu0 %v3277_v26  ;;  %2680 = vmatprep.subr.bf16.mxu1 %v3158_v40 }
 0x3a6   :  { %2653 = vmatpush1.bf16.msra.mxu0 %v3281_v34  ;;  %2682 = vmatpush3.bf16.msra.mxu1 %v3308_v61 }
 0x3a7   :  { %2655 = vmatprep.subr.bf16.mxu0 %v3284_v35  ;;  %2683 = vmatprep.subr.bf16.mxu1 %v3158_v40 }
 0x3aa   :  { %2657 = vmatpush1.bf16.msra.mxu0 %v3291_v45  ;;  %2685 = vmatpush3.bf16.msra.mxu1 %v3319_v10 }
 0x3ab   :  { %2659 = vmatprep.subr.bf16.mxu0 %v3294_v46  ;;  %2686 = vmatprep.subr.bf16.mxu1 %v3158_v40 }
 0x3ae   :  { %2661 = vmatpush1.bf16.msra.mxu0 %v3302_v55  ;;  %2688 = vmatpush3.bf16.msra.mxu1 %v3330_v20 }
 0x3af   :  { %2663 = vmatprep.subr.bf16.mxu0 %v3305_v56  ;;  %2689 = vmatprep.subr.bf16.mxu1 %v3158_v40 }
 0x3b2   :  { %2665 = vmatpush1.bf16.msra.mxu0 %v3313_v2  ;;  %2691 = vmatpush3.bf16.msra.mxu1 %v3341_v24 }
 0x3b3   :  { %2667 = vmatprep.subr.bf16.mxu0 %v3316_v4  ;;  %2692 = vmatprep.subr.bf16.mxu1 %v3158_v40 }
 0x3b6   :  { %2669 = vmatpush1.bf16.msra.mxu0 %v3324_v13  ;;  %2694 = vmatpush3.bf16.msra.mxu1 %v3350_v30 }
 0x3b7   :  { %2671 = vmatprep.subr.bf16.mxu0 %v3327_v15  ;;  %2695 = vmatprep.subr.bf16.mxu1 %v3158_v40 }
 0x3ba   :  { %2673 = vmatpush1.bf16.msra.mxu0 %v3337_v23  ;;  %2697 = vmatpush3.bf16.msra.mxu1 %v3358_v33 }
 0x3bb   :  { %2699 = vmatprep.subr.bf16.mxu0 %v3264_v9  ;;  %2730 = vmatprep.subr.bf16.mxu1 %v3158_v40 }
 0x470   :  { %v1038_v52 = vpop.f32.mrb[6].mxu0  ;;  %v1109_v32 = vpop.f32.mrb[14].mxu1 }
 0x471   :  { %v2879_v36 = vadd.f32 %v3416_v7, %v1038_v52  ;;  %v1040_v43 = vpop.f32.mrb[7].mxu0  ;;  %v2213_v48 = vpop.f32.mrb[15].mxu1  ;;  %v1110_v62 = vadd.f32 %v1109_v32, %v3422_v37 }
 0x472   :  { %v2881_v50 = vadd.f32 %v3419_v22, %v1040_v43 }
 0x473   :  { %v1860_v39 = vmul.f32 -1.442695, %v2879_v36 }
 0x474   :  { %v1861_v53 = vmul.f32 -1.442695, %v2881_v50 }
 0x475   :  { %2957 = vpow2.f32 %v1860_v39 }
 0x476   :  { %2959 = vpow2.f32 %v1861_v53 }
 0x47f   :  { %v2958_v57 = vpop.eup %2957 }
 0x480   :  { %v1125_v44 = vadd.f32 1.0, %v2958_v57  ;;  %v2960_v59 = vpop.eup %2959 }
 0x481   :  { %v1126_v8 = vadd.f32 1.0, %v2960_v59 }
 0x482   :  { %2961 = vrcp.f32 %v1125_v44 }
 0x48c   :  { %v2962_v1 = vpop.eup %2961 }
 0x48d   :  { %v1131_v5 = vmul.f32 %v2962_v1, %v1110_v62 }
 0x48f   :  { %v1132_v6 = vadd.f32 %v1131_v5, %v3401_v49 }
 0x491   :  { %2963 = vtanh.f32 %v1132_v6 }
 0x492   :  { %2965 = vrcp.f32 %v1126_v8 }
 0x49b   :  { %v2964_v11 = vpop.eup %2963 }
 0x49c   :  { %v1134_v29 = vsub.f32 %v3516_v31, %v2964_v11  ;;  %v2966_v38 = vpop.eup %2965 }
 0x49e   :  { %v1135_v42 = vmul.f32 %v2966_v38, %v1134_v29 }
 0x4a0   :  { %v3561_v47 = vadd.f32 %v2964_v11, %v1135_v42 }
 0x4a2   :  { %1139 = vst [vmem:[#allocation12 + $0x18] sm:$0xff] %v3561_v47  ;;  %1206 = vmatmul.mubr.f32.vlgmr.msra.gmra.mrb[8].mxu0 %v3561_v47  ;;  %2247 = vmatmul.mubr.f32.vlgmr.msra.gmra.mrb[16].mxu1 %v3561_v47 }
 0x4a3   :  { %2701 = vmatpush1.bf16.msra.mxu0 %v3266_v17  ;;  %2732 = vmatpush3.bf16.msra.mxu1 %v3287_v41 }
 0x4a4   :  { %2703 = vmatprep.subr.bf16.mxu0 %v3269_v18  ;;  %2733 = vmatprep.subr.bf16.mxu1 %v3158_v40 }
 0x4a5   :  { %1374 = vmatprep.mubr.f32.mxu0 %v3157_v0  ;;  %2281 = vmatprep.mubr.msk.f32.mxu1 %vm3159_vm0, %v3157_v0 }
 0x4a7   :  { %2705 = vmatpush1.bf16.msra.mxu0 %v3274_v25  ;;  %2735 = vmatpush3.bf16.msra.mxu1 %v3297_v51 }
 0x4a8   :  { %2707 = vmatprep.subr.bf16.mxu0 %v3277_v26  ;;  %2736 = vmatprep.subr.bf16.mxu1 %v3158_v40 }
 0x4ab   :  { %2709 = vmatpush1.bf16.msra.mxu0 %v3281_v34  ;;  %2738 = vmatpush3.bf16.msra.mxu1 %v3308_v61 }
 0x4ac   :  { %2711 = vmatprep.subr.bf16.mxu0 %v3284_v35  ;;  %2739 = vmatprep.subr.bf16.mxu1 %v3158_v40 }
 0x4af   :  { %2713 = vmatpush1.bf16.msra.mxu0 %v3291_v45  ;;  %2741 = vmatpush3.bf16.msra.mxu1 %v3319_v10 }
 0x4b0   :  { %2715 = vmatprep.subr.bf16.mxu0 %v3294_v46  ;;  %2742 = vmatprep.subr.bf16.mxu1 %v3158_v40 }
 0x4b3   :  { %2717 = vmatpush1.bf16.msra.mxu0 %v3302_v55  ;;  %2744 = vmatpush3.bf16.msra.mxu1 %v3330_v20 }
 0x4b4   :  { %2719 = vmatprep.subr.bf16.mxu0 %v3305_v56  ;;  %2745 = vmatprep.subr.bf16.mxu1 %v3158_v40 }
 0x4b7   :  { %2721 = vmatpush1.bf16.msra.mxu0 %v3313_v2  ;;  %2747 = vmatpush3.bf16.msra.mxu1 %v3341_v24 }
 0x4b8   :  { %2723 = vmatprep.subr.bf16.mxu0 %v3316_v4  ;;  %2748 = vmatprep.subr.bf16.mxu1 %v3158_v40 }
 0x4bb   :  { %2725 = vmatpush1.bf16.msra.mxu0 %v3324_v13  ;;  %2750 = vmatpush3.bf16.msra.mxu1 %v3350_v30 }
 0x4bc   :  { %2727 = vmatprep.subr.bf16.mxu0 %v3327_v15  ;;  %2751 = vmatprep.subr.bf16.mxu1 %v3158_v40 }
 0x4bf   :  { %2729 = vmatpush1.bf16.msra.mxu0 %v3337_v23  ;;  %2753 = vmatpush3.bf16.msra.mxu1 %v3358_v33 }
 0x4c0   :  { %2755 = vmatprep.subr.bf16.mxu0 %v3264_v9  ;;  %2786 = vmatprep.subr.bf16.mxu1 %v3158_v40 }
 0x575   :  { %v1207_v49 = vpop.f32.mrb[8].mxu0  ;;  %v1278_v60 = vpop.f32.mrb[16].mxu1 }
 0x576   :  { %v2883_v12 = vadd.f32 %v3416_v7, %v1207_v49  ;;  %v1209_v14 = vpop.f32.mrb[9].mxu0  ;;  %v2248_v16 = vpop.f32.mrb[17].mxu1  ;;  %v1279_v32 = vadd.f32 %v1278_v60, %v3422_v37 }
 0x577   :  { %v2885_v21 = vadd.f32 %v3419_v22, %v1209_v14 }
 0x578   :  { %v1862_v19 = vmul.f32 -1.442695, %v2883_v12 }
 0x579   :  { %v1863_v27 = vmul.f32 -1.442695, %v2885_v21 }
 0x57a   :  { %2967 = vpow2.f32 %v1862_v19 }
 0x57b   :  { %2969 = vpow2.f32 %v1863_v27 }
 0x584   :  { %v2968_v28 = vpop.eup %2967 }
 0x585   :  { %v1294_v31 = vadd.f32 1.0, %v2968_v28  ;;  %v2970_v52 = vpop.eup %2969 }
 0x586   :  { %v1295_v39 = vadd.f32 1.0, %v2970_v52 }
 0x587   :  { %2971 = vrcp.f32 %v1294_v31 }
 0x591   :  { %v2972_v36 = vpop.eup %2971 }
 0x592   :  { %v1300_v43 = vmul.f32 %v2972_v36, %v1279_v32 }
 0x594   :  { %v1301_v48 = vadd.f32 %v1300_v43, %v3407_v58 }
 0x596   :  { %2973 = vtanh.f32 %v1301_v48 }
 0x597   :  { %2975 = vrcp.f32 %v1295_v39 }
 0x5a0   :  { %v2974_v50 = vpop.eup %2973 }
 0x5a1   :  { %v1303_v53 = vsub.f32 %v3561_v47, %v2974_v50  ;;  %v2976_v57 = vpop.eup %2975 }
 0x5a3   :  { %v1304_v44 = vmul.f32 %v2976_v57, %v1303_v53 }
 0x5a5   :  { %v3606_v59 = vadd.f32 %v2974_v50, %v1304_v44 }
 0x5a7   :  { %1308 = vst [vmem:[#allocation12 + $0x20] sm:$0xff] %v3606_v59  ;;  %1375 = vmatmul.mubr.f32.vlgmr.msra.gmra.mrb[10].mxu0 %v3606_v59  ;;  %2282 = vmatmul.mubr.f32.vlgmr.msra.gmra.mrb[18].mxu1 %v3606_v59 }
 0x5a8   :  { %2757 = vmatpush1.bf16.msra.mxu0 %v3266_v17  ;;  %2788 = vmatpush3.bf16.msra.mxu1 %v3287_v41 }
 0x5a9   :  { %2759 = vmatprep.subr.bf16.mxu0 %v3269_v18  ;;  %2789 = vmatprep.subr.bf16.mxu1 %v3158_v40 }
 0x5aa   :  { %1543 = vmatprep.mubr.f32.mxu0 %v3157_v0  ;;  %2316 = vmatprep.mubr.msk.f32.mxu1 %vm3159_vm0, %v3157_v0 }
 0x5ac   :  { %2761 = vmatpush1.bf16.msra.mxu0 %v3274_v25  ;;  %2791 = vmatpush3.bf16.msra.mxu1 %v3297_v51 }
 0x5ad   :  { %2763 = vmatprep.subr.bf16.mxu0 %v3277_v26  ;;  %2792 = vmatprep.subr.bf16.mxu1 %v3158_v40 }
 0x5b0   :  { %2765 = vmatpush1.bf16.msra.mxu0 %v3281_v34  ;;  %2794 = vmatpush3.bf16.msra.mxu1 %v3308_v61 }
 0x5b1   :  { %2767 = vmatprep.subr.bf16.mxu0 %v3284_v35  ;;  %2795 = vmatprep.subr.bf16.mxu1 %v3158_v40 }
 0x5b4   :  { %2769 = vmatpush1.bf16.msra.mxu0 %v3291_v45  ;;  %2797 = vmatpush3.bf16.msra.mxu1 %v3319_v10 }
 0x5b5   :  { %2771 = vmatprep.subr.bf16.mxu0 %v3294_v46  ;;  %2798 = vmatprep.subr.bf16.mxu1 %v3158_v40 }
 0x5b8   :  { %2773 = vmatpush1.bf16.msra.mxu0 %v3302_v55  ;;  %2800 = vmatpush3.bf16.msra.mxu1 %v3330_v20 }
 0x5b9   :  { %2775 = vmatprep.subr.bf16.mxu0 %v3305_v56  ;;  %2801 = vmatprep.subr.bf16.mxu1 %v3158_v40 }
 0x5bc   :  { %2777 = vmatpush1.bf16.msra.mxu0 %v3313_v2  ;;  %2803 = vmatpush3.bf16.msra.mxu1 %v3341_v24 }
 0x5bd   :  { %2779 = vmatprep.subr.bf16.mxu0 %v3316_v4  ;;  %2804 = vmatprep.subr.bf16.mxu1 %v3158_v40 }
 0x5c0   :  { %2781 = vmatpush1.bf16.msra.mxu0 %v3324_v13  ;;  %2806 = vmatpush3.bf16.msra.mxu1 %v3350_v30 }
 0x5c1   :  { %2783 = vmatprep.subr.bf16.mxu0 %v3327_v15  ;;  %2807 = vmatprep.subr.bf16.mxu1 %v3158_v40 }
 0x5c4   :  { %2785 = vmatpush1.bf16.msra.mxu0 %v3337_v23  ;;  %2809 = vmatpush3.bf16.msra.mxu1 %v3358_v33 }
 0x5c5   :  { %2811 = vmatprep.subr.bf16.mxu0 %v3264_v9  ;;  %2842 = vmatprep.subr.bf16.mxu1 %v3158_v40 }
 0x67a   :  { %v1376_v58 = vpop.f32.mrb[10].mxu0  ;;  %v1447_v62 = vpop.f32.mrb[18].mxu1 }
 0x67b   :  { %v2887_v1 = vadd.f32 %v3416_v7, %v1376_v58  ;;  %v1378_v5 = vpop.f32.mrb[11].mxu0  ;;  %v2283_v6 = vpop.f32.mrb[19].mxu1  ;;  %v1448_v9 = vadd.f32 %v1447_v62, %v3422_v37 }
 0x67c   :  { %v2889_v11 = vadd.f32 %v3419_v22, %v1378_v5 }
 0x67d   :  { %v1864_v8 = vmul.f32 -1.442695, %v2887_v1 }
 0x67e   :  { %v1865_v29 = vmul.f32 -1.442695, %v2889_v11 }
 0x67f   :  { %2977 = vpow2.f32 %v1864_v8 }
 0x680   :  { %2979 = vpow2.f32 %v1865_v29 }
 0x689   :  { %v2978_v38 = vpop.eup %2977 }
 0x68a   :  { %v1463_v42 = vadd.f32 1.0, %v2978_v38  ;;  %v2980_v47 = vpop.eup %2979 }
 0x68b   :  { %v1464_v14 = vadd.f32 1.0, %v2980_v47 }
 0x68c   :  { %2981 = vrcp.f32 %v1463_v42 }
 0x696   :  { %v2982_v49 = vpop.eup %2981 }
 0x697   :  { %v1469_v60 = vmul.f32 %v2982_v49, %v1448_v9 }
 0x699   :  { %v1470_v12 = vadd.f32 %v1469_v60, %v3405_v54 }
 0x69b   :  { %2983 = vtanh.f32 %v1470_v12 }
 0x69c   :  { %2985 = vrcp.f32 %v1464_v14 }
 0x6a5   :  { %v2984_v16 = vpop.eup %2983 }
 0x6a6   :  { %v1472_v19 = vsub.f32 %v3606_v59, %v2984_v16  ;;  %v2986_v21 = vpop.eup %2985 }
 0x6a8   :  { %v1473_v27 = vmul.f32 %v2986_v21, %v1472_v19 }
 0x6aa   :  { %v1474_v28 = vadd.f32 %v2984_v16, %v1473_v27 }
 0x6ac   :  { %1477 = vst [vmem:[#allocation12 + $0x28] sm:$0xff] %v1474_v28  ;;  %1544 = vmatmul.mubr.f32.vlgmr.msra.gmra.mrb[12].mxu0 %v1474_v28  ;;  %2317 = vmatmul.mubr.f32.vlgmr.msra.gmra.mrb[20].mxu1 %v1474_v28 }
 0x6ad   :  { %2813 = vmatpush1.bf16.msra.mxu0 %v3266_v17  ;;  %2844 = vmatpush3.bf16.msra.mxu1 %v3287_v41 }
 0x6ae   :  { %2815 = vmatprep.subr.bf16.mxu0 %v3269_v18  ;;  %2845 = vmatprep.subr.bf16.mxu1 %v3158_v40 }
 0x6af   :  { %1712 = vmatprep.mubr.f32.mxu0 %v3157_v0  ;;  %2351 = vmatprep.mubr.msk.f32.mxu1 %vm3159_vm0, %v3157_v0 }
 0x6b1   :  { %2817 = vmatpush1.bf16.msra.mxu0 %v3274_v25  ;;  %2847 = vmatpush3.bf16.msra.mxu1 %v3297_v51 }
 0x6b2   :  { %2819 = vmatprep.subr.bf16.mxu0 %v3277_v26  ;;  %2848 = vmatprep.subr.bf16.mxu1 %v3158_v40 }
 0x6b5   :  { %2821 = vmatpush1.bf16.msra.mxu0 %v3281_v34  ;;  %2850 = vmatpush3.bf16.msra.mxu1 %v3308_v61 }
 0x6b6   :  { %2823 = vmatprep.subr.bf16.mxu0 %v3284_v35  ;;  %2851 = vmatprep.subr.bf16.mxu1 %v3158_v40 }
 0x6b9   :  { %2825 = vmatpush1.bf16.msra.mxu0 %v3291_v45  ;;  %2853 = vmatpush3.bf16.msra.mxu1 %v3319_v10 }
 0x6ba   :  { %2827 = vmatprep.subr.bf16.mxu0 %v3294_v46  ;;  %2854 = vmatprep.subr.bf16.mxu1 %v3158_v40 }
 0x6bd   :  { %2829 = vmatpush1.bf16.msra.mxu0 %v3302_v55  ;;  %2856 = vmatpush3.bf16.msra.mxu1 %v3330_v20 }
 0x6be   :  { %2831 = vmatprep.subr.bf16.mxu0 %v3305_v56  ;;  %2857 = vmatprep.subr.bf16.mxu1 %v3158_v40 }
 0x6c1   :  { %2833 = vmatpush1.bf16.msra.mxu0 %v3313_v2  ;;  %2859 = vmatpush3.bf16.msra.mxu1 %v3341_v24 }
 0x6c2   :  { %2835 = vmatprep.subr.bf16.mxu0 %v3316_v4  ;;  %2860 = vmatprep.subr.bf16.mxu1 %v3158_v40 }
 0x6c5   :  { %2837 = vmatpush1.bf16.msra.mxu0 %v3324_v13  ;;  %2862 = vmatpush3.bf16.msra.mxu1 %v3350_v30 }
 0x6c6   :  { %2839 = vmatprep.subr.bf16.mxu0 %v3327_v15  ;;  %2863 = vmatprep.subr.bf16.mxu1 %v3158_v40 }
 0x6c9   :  { %2841 = vmatpush1.bf16.msra.mxu0 %v3337_v23  ;;  %2865 = vmatpush3.bf16.msra.mxu1 %v3358_v33 }
 0x77f   :  { %v1545_v0 = vpop.f32.mrb[12].mxu0  ;;  %v1616_v17 = vpop.f32.mrb[20].mxu1 }
 0x780   :  { %v2891_v18 = vadd.f32 %v3416_v7, %v1545_v0  ;;  %v1547_v25 = vpop.f32.mrb[13].mxu0  ;;  %v2318_v26 = vpop.f32.mrb[21].mxu1  ;;  %v1617_v51 = vadd.f32 %v1616_v17, %v3422_v37 }
 0x781   :  { %v2893_v35 = vadd.f32 %v3419_v22, %v1547_v25 }
 0x782   :  { %v1866_v34 = vmul.f32 -1.442695, %v2891_v18 }
 0x783   :  { %v1867_v41 = vmul.f32 -1.442695, %v2893_v35 }
 0x784   :  { %2987 = vpow2.f32 %v1866_v34 }
 0x785   :  { %2989 = vpow2.f32 %v1867_v41 }
 0x78e   :  { %v2988_v45 = vpop.eup %2987 }
 0x78f   :  { %v1632_v46 = vadd.f32 1.0, %v2988_v45  ;;  %v2990_v40 = vpop.eup %2989 }
 0x790   :  { %v1633_v2 = vadd.f32 1.0, %v2990_v40 }
 0x791   :  { %2991 = vrcp.f32 %v1632_v46 }
 0x79b   :  { %v2992_v55 = vpop.eup %2991 }
 0x79c   :  { %v1638_v56 = vmul.f32 %v2992_v55, %v1617_v51 }
 0x79e   :  { %v1639_v61 = vadd.f32 %v1638_v56, %v3414_v3 }
 0x7a0   :  { %2993 = vtanh.f32 %v1639_v61 }
 0x7a1   :  { %2995 = vrcp.f32 %v1633_v2 }
 0x7aa   :  { %v2994_v4 = vpop.eup %2993 }
 0x7ab   :  { %v1641_v10 = vsub.f32 %v1474_v28, %v2994_v4  ;;  %v2996_v13 = vpop.eup %2995 }
 0x7ad   :  { %v1642_v15 = vmul.f32 %v2996_v13, %v1641_v10 }
 0x7af   :  { %v1643_v20 = vadd.f32 %v2994_v4, %v1642_v15 }
 0x7b1   :  { %1646 = vst [vmem:[#allocation12 + $0x30] sm:$0xff] %v1643_v20  ;;  %1713 = vmatmul.mubr.f32.vlgmr.msra.gmra.mrb[14].mxu0 %v1643_v20  ;;  %2352 = vmatmul.mubr.f32.vlgmr.msra.gmra.mrb[22].mxu1 %v1643_v20 }
 0x884   :  { %v1714_v23 = vpop.f32.mrb[14].mxu0  ;;  %v1785_v24 = vpop.f32.mrb[22].mxu1 }
 0x885   :  { %v2895_v30 = vadd.f32 %v3416_v7, %v1714_v23  ;;  %v1716_v33 = vpop.f32.mrb[15].mxu0  ;;  %v2353_v54 = vpop.f32.mrb[23].mxu1  ;;  %v1786_v48 = vadd.f32 %v1785_v24, %v3422_v37 }
 0x886   :  { %v2897_v3 = vadd.f32 %v3419_v22, %v1716_v33 }
 0x887   :  { %v1868_v31 = vmul.f32 -1.442695, %v2895_v30 }
 0x888   :  { %v1869_v52 = vmul.f32 -1.442695, %v2897_v3 }
 0x889   :  { %2997 = vpow2.f32 %v1868_v31 }
 0x88a   :  { %2999 = vpow2.f32 %v1869_v52 }
 0x893   :  { %v2998_v32 = vpop.eup %2997 }
 0x894   :  { %v1801_v36 = vadd.f32 1.0, %v2998_v32  ;;  %v3000_v43 = vpop.eup %2999 }
 0x895   :  { %v1802_v57 = vadd.f32 1.0, %v3000_v43 }
 0x896   :  { %3001 = vrcp.f32 %v1801_v36 }
 0x8a0   :  { %v3002_v39 = vpop.eup %3001 }
 0x8a1   :  { %v1807_v50 = vmul.f32 %v3002_v39, %v1786_v48 }
 0x8a3   :  { %v1808_v53 = vadd.f32 %v1807_v50, %v3412_v63 }
 0x8a5   :  { %3003 = vtanh.f32 %v1808_v53 }
 0x8a6   :  { %3005 = vrcp.f32 %v1802_v57 }
 0x8af   :  { %v3004_v7 = vpop.eup %3003 }
 0x8b0   :  { %v1810_v44 = vsub.f32 %v1643_v20, %v3004_v7  ;;  %v3006_v59 = vpop.eup %3005 }
 0x8b2   :  { %v1811_v22 = vmul.f32 %v3006_v59, %v1810_v44 }
 0x8b4   :  { %v1812_v58 = vadd.f32 %v3004_v7, %v1811_v22 }
 0x8b6   :  { %1815 = vst [vmem:[#allocation12 + $0x38] sm:$0xff] %v1812_v58  ;;  %1820 = vst [vmem:[#allocation13] sm:$0xff] %v1812_v58 }
 0x8b7   :  { %3106 = shalt.err (!%p3103_p8)
}
 0x8b8   :  { %s3107_s0 = scalar_lea.hbm %s3725_s6, 1024 }
 0x8b9   :  { %p3108_p9 = scmp.ne.s32.totalorder %s3725_s6, %s3107_s0  ;;  %p3111_p10 = scmp.lt.u32.totalorder %s3107_s0, %s3725_s6 }
 0x8bb   :  { %p3113_p11 = pnand %p3111_p10, %p3108_p9 }
 0x8bd   :  { %3116 = shalt.err (!%p3113_p11)
}
 0x8be   :  { %1832 = dma.vmem_to_hbm [thread:$0]  %s1827_s8, 1024, %s3725_s6, [#allocation6], %s3151_s1, %s3151_s1, %s3152_s23  }
 0x8bf   :  { %s3117_s19 = scalar_lea.vmem %s1840_s10, 128  ;;  %p3122_p13 = scmp.lt.s32.totalorder %s1840_s10, %s1840_s10 }
 0x8c0   :  { %p3118_p12 = scmp.ne.s32.totalorder %s1840_s10, %s3117_s19  ;;  %p3123_p0 = scmp.lt.s32.totalorder %s3117_s19, %s3117_s19 }
 0x8c2   :  { %p3124_p1 = por %p3123_p0, %p3122_p13 }
 0x8c4   :  { %p3125_p2 = pnand %p3124_p1, %p3118_p12 }
 0x8c6   :  { %3128 = shalt.err (!%p3125_p2)
}
 0x8c7   :  { %s3129_s22 = scalar_lea.hbm %s3726_s7, 128 }
 0x8c8   :  { %p3130_p3 = scmp.ne.s32.totalorder %s3726_s7, %s3129_s22  ;;  %p3133_p4 = scmp.lt.u32.totalorder %s3129_s22, %s3726_s7 }
 0x8ca   :  { %p3135_p5 = pnand %p3133_p4, %p3130_p3 }
 0x8cc   :  { %3138 = shalt.err (!%p3135_p5)
}
 0x8cd   :  { %1842 = dma.vmem_to_hbm [thread:$0]  %s1840_s10, 128, %s3726_s7, [#allocation14]  }
 0x8ce   :  { %3145 = dma.done.wait [#allocation6], 1024  }
 0x8cf   :  { %3146 = vsyncadd [#allocation6], 4294966272 }
 0x8d0   :  { %3147 = dma.done.wait [#allocation14], 128  }
 0x8d1   :  { %3148 = vsyncadd [#allocation14], 4294967168 }
 0x8d2   :  { %1849 = vsyncpa [#allocation5], 1 }
 0x8d3   :  { %1850 = vsyncpa [#allocation8], 1 }
 0x8d4   :  { %1851 = vsyncpa [#allocation11], 1 }
 0x8d5   :  { %1852 = vsyncpa [#allocation6], 1 }
 0x8d6   :  { %1853 = vsyncpa [#allocation14], 1 }

</bundles_post_ra>
